<compile_context>
chip_gen: v7x
topology: tpu7x:2x2x1
jax: 0.10.0
libtpu: 0.0.40
codegen_flags: <defaults>
</compile_context>

<pallas_src>
import jax
import jax.numpy as jnp
from jax.experimental import pallas as pl
from jax.experimental.pallas import tpu as pltpu


N_ACTION = 7    # "action" head output width (uses task description)
N_GRIPPER = 1   # "gripper" head output width (does not use task description)
HEAD_OUT = N_ACTION + N_GRIPPER


# ----------------------------------------------------------------------------
# Fused Pallas kernel: whole ImageAngleNet forward in one grid step.
# ----------------------------------------------------------------------------
def _image_angle_fused_kernel(
        xd_ref, xw_ref, pool_ref, ang_ref, task_ref,
        wcd_ref, bcd_ref, wcw_ref, bcw_ref,
        wfd_ref, bfd_ref, wfw_ref, bfw_ref,
        wfa_ref, bfa_ref,
        wnd_ref, wnw_ref, wna_ref, bn_ref,
        whf_ref, wht_ref, bh_ref,
        out_ref):
    bf16 = jnp.bfloat16

    def dot(a, b):
        return jnp.dot(a, b, preferred_element_type=jnp.float32)

    def relu(v):
        return jnp.maximum(v, 0.0)

    pool = pool_ref[...]                                           # [B, B*HW] bf16

    def conv_backbone(x_ref, wc_ref, bc_ref, wf_ref, bf_ref):
        # 3x3 conv as one im2col matmul + bias + ReLU
        conv = relu(dot(x_ref[...], wc_ref[...]) + bc_ref[...])    # [B*HW, F] f32
        # global average pool as an MXU matmul with the pooling matrix
        pooled = dot(pool, conv.astype(bf16))                      # [B, F] f32
        # trailing fully-connected + ReLU
        return relu(dot(pooled.astype(bf16), wf_ref[...]) + bf_ref[...])

    feat_d = conv_backbone(xd_ref, wcd_ref, bcd_ref, wfd_ref, bfd_ref)   # [B, F]
    feat_w = conv_backbone(xw_ref, wcw_ref, bcw_ref, wfw_ref, bfw_ref)   # [B, F]
    feat_a = relu(dot(ang_ref[...].astype(bf16), wfa_ref[...]) + bfa_ref[...])

    # neck on concat(depth, wrist, angle): concat folded into split weights
    neck = relu(dot(feat_d.astype(bf16), wnd_ref[...])
                + dot(feat_w.astype(bf16), wnw_ref[...])
                + dot(feat_a.astype(bf16), wna_ref[...])
                + bn_ref[...])                                     # [B, neck]

    # both heads in one lane-packed output slab:
    #   cols 0:7 = action(features ++ task), col 7 = gripper(features)
    out = (dot(neck.astype(bf16), whf_ref[...])
           + dot(task_ref[...].astype(bf16), wht_ref[...])
           + bh_ref[...])                                          # [B, 8]
    out_ref[...] = out.astype(out_ref.dtype)


# ----------------------------------------------------------------------------
# Glue: im2col layout for the 3x3 / pad=1 conv (fuses into one XLA op under jit)
# ----------------------------------------------------------------------------
def _im2col_3x3(x_nchw):
    """[B, Cin, H, W] (NCHW) -> [B*H*W, 9*Cin] bf16 patch matrix."""
    B, Cin, H, W = x_nchw.shape
    x = jnp.transpose(x_nchw, (0, 2, 3, 1))                        # NHWC
    xp = jnp.pad(x, ((0, 0), (1, 1), (1, 1), (0, 0)))
    taps = [xp[:, dy:dy + H, dx:dx + W, :] for dy in range(3) for dx in range(3)]
    patches = jnp.stack(taps, axis=3)                              # [B, H, W, 9, Cin]
    return patches.reshape(B * H * W, 9 * Cin).astype(jnp.bfloat16)


# ----------------------------------------------------------------------------
# ImageAngleNet forward (single pallas_call)
# ----------------------------------------------------------------------------
def image_angle_net_forward(prepared, depth_frames, wrist_frames, angles,
                            task_description_embedding):
    B, _, H, W = depth_frames.shape
    HW = H * W

    xd = _im2col_3x3(depth_frames)                                 # [B*HW, 9*Cin]
    xw = _im2col_3x3(wrist_frames)                                 # [B*HW, 9*Cin]
    # pooling matrix: row b averages rows b*HW .. (b+1)*HW  (1/HW exact in bf16)
    pool = (jnp.repeat(jnp.eye(B, dtype=jnp.float32), HW, axis=1)
            / float(HW)).astype(jnp.bfloat16)                      # [B, B*HW]

    pp = prepared
    args = (xd, xw, pool, angles, task_description_embedding,
            pp["wcd"], pp["bcd"], pp["wcw"], pp["bcw"],
            pp["wfd"], pp["bfd"], pp["wfw"], pp["bfw"],
            pp["wfa"], pp["bfa"],
            pp["wn_d"], pp["wn_w"], pp["wn_a"], pp["bn"],
            pp["wh_f"], pp["wh_t"], pp["bh"])

    out = pl.pallas_call(
        _image_angle_fused_kernel,
        out_shape=jax.ShapeDtypeStruct((B, HEAD_OUT), jnp.float32),
        grid=(1,),
        in_specs=[pl.BlockSpec(a.shape, lambda i: (0, 0)) for a in args],
        out_specs=pl.BlockSpec((B, HEAD_OUT), lambda i: (0, 0)),
        compiler_params=pltpu.CompilerParams(
            dimension_semantics=("arbitrary",)),
    )(*args)

    return {"action": out[:, :N_ACTION], "gripper": out[:, N_ACTION:]}


# ----------------------------------------------------------------------------
# Deterministic parameter construction + one-time packing for the kernel
# ----------------------------------------------------------------------------
def _init_linear(key, fan_in, fan_out):
    kw, kb = jax.random.split(key)
    scale = 1.0 / jnp.sqrt(jnp.float32(fan_in))
    w = jax.random.uniform(kw, (fan_in, fan_out), jnp.float32, -scale, scale)
    b = jax.random.uniform(kb, (fan_out,), jnp.float32, -scale, scale)
    return w, b


def _init_conv(key, cin, cout):
    kw, kb = jax.random.split(key)
    fan_in = cin * 9
    scale = 1.0 / jnp.sqrt(jnp.float32(fan_in))
    w = jax.random.uniform(kw, (3, 3, cin, cout), jnp.float32, -scale, scale)
    b = jax.random.uniform(kb, (cout,), jnp.float32, -scale, scale)
    return w, b


def init_params(key, *, cin=4, angle_dim=8, feat=32, neck_dim=64, task_dim=32):
    ks = jax.random.split(key, 8)
    p = {}
    p["depth_conv_w"], p["depth_conv_b"] = _init_conv(ks[0], cin, feat)
    p["depth_fc_w"], p["depth_fc_b"] = _init_linear(ks[1], feat, feat)
    p["wrist_conv_w"], p["wrist_conv_b"] = _init_conv(ks[2], cin, feat)
    p["wrist_fc_w"], p["wrist_fc_b"] = _init_linear(ks[3], feat, feat)
    p["angle_fc_w"], p["angle_fc_b"] = _init_linear(ks[4], angle_dim, feat)
    p["neck_w"], p["neck_b"] = _init_linear(ks[5], 3 * feat, neck_dim)
    p["head_action_w"], p["head_action_b"] = _init_linear(ks[6], neck_dim + task_dim, N_ACTION)
    p["head_gripper_w"], p["head_gripper_b"] = _init_linear(ks[7], neck_dim, N_GRIPPER)
    return p


def prepare_params(p):
    """One-time packing: bf16 weights, f32 bias rows, concat folded into splits."""
    bf = lambda a: a.astype(jnp.bfloat16)
    cin = p["depth_conv_w"].shape[2]
    feat = p["depth_conv_w"].shape[3]
    neck_dim = p["neck_w"].shape[1]
    task_dim = p["head_action_w"].shape[0] - neck_dim

    # Neck weight split by concat source (depth | wrist | angle).
    wn = p["neck_w"]
    # Heads packed into one [.., 8] slab: action in cols 0:7, gripper in col 7.
    wh_f = jnp.concatenate([p["head_action_w"][:neck_dim, :],
                            p["head_gripper_w"]], axis=1)                  # [neck, 8]
    wh_t = jnp.concatenate([p["head_action_w"][neck_dim:, :],
                            jnp.zeros((task_dim, N_GRIPPER), jnp.float32)], axis=1)  # [task, 8]
    bh = jnp.concatenate([p["head_action_b"], p["head_gripper_b"]]).reshape(1, HEAD_OUT)

    return {
        "wcd": bf(p["depth_conv_w"].reshape(9 * cin, feat)),
        "bcd": p["depth_conv_b"].reshape(1, feat),
        "wcw": bf(p["wrist_conv_w"].reshape(9 * cin, feat)),
        "bcw": p["wrist_conv_b"].reshape(1, feat),
        "wfd": bf(p["depth_fc_w"]), "bfd": p["depth_fc_b"].reshape(1, feat),
        "wfw": bf(p["wrist_fc_w"]), "bfw": p["wrist_fc_b"].reshape(1, feat),
        "wfa": bf(p["angle_fc_w"]), "bfa": p["angle_fc_b"].reshape(1, feat),
        "wn_d": bf(wn[0:feat, :]),
        "wn_w": bf(wn[feat:2 * feat, :]),
        "wn_a": bf(wn[2 * feat:3 * feat, :]),
        "bn": p["neck_b"].reshape(1, neck_dim),
        "wh_f": bf(wh_f), "wh_t": bf(wh_t), "bh": bh,
    }


# ----------------------------------------------------------------------------
# Pure-JAX reference (same packed weights, f32 math) for a sanity check
# ----------------------------------------------------------------------------
def _reference_forward(pp, depth_frames, wrist_frames, angles, task):
    f32 = lambda a: a.astype(jnp.float32)
    relu = lambda v: jnp.maximum(v, 0.0)
    B, _, H, W = depth_frames.shape
    HW = H * W
    pool = jnp.repeat(jnp.eye(B, dtype=jnp.float32), HW, axis=1) / float(HW)

    def backbone(x_nchw, wc, bc, wfc, bfc):
        x = f32(_im2col_3x3(x_nchw))
        conv = relu(x @ f32(wc) + bc)
        pooled = pool @ conv
        return relu(pooled @ f32(wfc) + bfc)

    d = backbone(depth_frames, pp["wcd"], pp["bcd"], pp["wfd"], pp["bfd"])
    w = backbone(wrist_frames, pp["wcw"], pp["bcw"], pp["wfw"], pp["bfw"])
    a = relu(f32(angles) @ f32(pp["wfa"]) + pp["bfa"])
    neck = relu(d @ f32(pp["wn_d"]) + w @ f32(pp["wn_w"]) + a @ f32(pp["wn_a"]) + pp["bn"])
    out = neck @ f32(pp["wh_f"]) + f32(task) @ f32(pp["wh_t"]) + pp["bh"]
    return {"action": out[:, :N_ACTION], "gripper": out[:, N_ACTION:]}


# ----------------------------------------------------------------------------
if __name__ == "__main__":
    key = jax.random.PRNGKey(0)
    k_params, k_d, k_w, k_a, k_t = jax.random.split(key, 5)

    B, Cin, H, W = 2, 4, 16, 16
    angle_dim, task_dim = 8, 32

    params = init_params(k_params, cin=Cin, angle_dim=angle_dim,
                         feat=32, neck_dim=64, task_dim=task_dim)
    prepared = prepare_params(params)

    depth_frames = jax.random.normal(k_d, (B, Cin, H, W), jnp.float32)   # NCHW
    wrist_frames = jax.random.normal(k_w, (B, Cin, H, W), jnp.float32)   # NCHW
    angles = jax.random.normal(k_a, (B, angle_dim), jnp.float32)
    task_embedding = jax.random.normal(k_t, (B, task_dim), jnp.float32)

    fwd = jax.jit(image_angle_net_forward)
    out = fwd(prepared, depth_frames, wrist_frames, angles, task_embedding)
    out = jax.block_until_ready(out)

    assert out["action"].shape == (B, N_ACTION)
    assert out["gripper"].shape == (B, N_GRIPPER)

    ref = _reference_forward(prepared, depth_frames, wrist_frames, angles, task_embedding)
    assert bool(jnp.allclose(out["action"], ref["action"], rtol=5e-2, atol=5e-2))
    assert bool(jnp.allclose(out["gripper"], ref["gripper"], rtol=5e-2, atol=5e-2))

    print("KERNEL_OK")
</pallas_src>

<mosaic_0001>
module attributes {stable_mosaic.version = 11 : i64} {
  func.func @_image_angle_fused_kernel(%arg0: i32, %arg1: memref<512x36xbf16, #tpu.memory_space<vmem>>, %arg2: memref<512x36xbf16, #tpu.memory_space<vmem>>, %arg3: memref<2x512xbf16, #tpu.memory_space<vmem>>, %arg4: memref<2x8xf32, #tpu.memory_space<vmem>>, %arg5: memref<2x32xf32, #tpu.memory_space<vmem>>, %arg6: memref<36x32xbf16, #tpu.memory_space<vmem>>, %arg7: memref<1x32xf32, #tpu.memory_space<vmem>>, %arg8: memref<36x32xbf16, #tpu.memory_space<vmem>>, %arg9: memref<1x32xf32, #tpu.memory_space<vmem>>, %arg10: memref<32x32xbf16, #tpu.memory_space<vmem>>, %arg11: memref<1x32xf32, #tpu.memory_space<vmem>>, %arg12: memref<32x32xbf16, #tpu.memory_space<vmem>>, %arg13: memref<1x32xf32, #tpu.memory_space<vmem>>, %arg14: memref<8x32xbf16, #tpu.memory_space<vmem>>, %arg15: memref<1x32xf32, #tpu.memory_space<vmem>>, %arg16: memref<32x64xbf16, #tpu.memory_space<vmem>>, %arg17: memref<32x64xbf16, #tpu.memory_space<vmem>>, %arg18: memref<32x64xbf16, #tpu.memory_space<vmem>>, %arg19: memref<1x64xf32, #tpu.memory_space<vmem>>, %arg20: memref<64x8xbf16, #tpu.memory_space<vmem>>, %arg21: memref<32x8xbf16, #tpu.memory_space<vmem>>, %arg22: memref<1x8xf32, #tpu.memory_space<vmem>>, %arg23: memref<2x8xf32, #tpu.memory_space<vmem>>) attributes {dimension_semantics = [#tpu.dimension_semantics<arbitrary>], iteration_bounds = array<i64: 1>, scalar_prefetch = 0 : i64, scratch_operands = 0 : i64, tpu.core_type = #tpu.core_type<tc>, window_params = [{pipeline_mode = #tpu.pipeline_mode<synchronous>, transform_indices = @transform_0, window_bounds = array<i64: 512, 36>}, {pipeline_mode = #tpu.pipeline_mode<synchronous>, transform_indices = @transform_1, window_bounds = array<i64: 512, 36>}, {pipeline_mode = #tpu.pipeline_mode<synchronous>, transform_indices = @transform_2, window_bounds = array<i64: 2, 512>}, {pipeline_mode = #tpu.pipeline_mode<synchronous>, transform_indices = @transform_3, window_bounds = array<i64: 2, 8>}, {pipeline_mode = #tpu.pipeline_mode<synchronous>, transform_indices = @transform_4, window_bounds = array<i64: 2, 32>}, {pipeline_mode = #tpu.pipeline_mode<synchronous>, transform_indices = @transform_5, window_bounds = array<i64: 36, 32>}, {pipeline_mode = #tpu.pipeline_mode<synchronous>, transform_indices = @transform_6, window_bounds = array<i64: 1, 32>}, {pipeline_mode = #tpu.pipeline_mode<synchronous>, transform_indices = @transform_7, window_bounds = array<i64: 36, 32>}, {pipeline_mode = #tpu.pipeline_mode<synchronous>, transform_indices = @transform_8, window_bounds = array<i64: 1, 32>}, {pipeline_mode = #tpu.pipeline_mode<synchronous>, transform_indices = @transform_9, window_bounds = array<i64: 32, 32>}, {pipeline_mode = #tpu.pipeline_mode<synchronous>, transform_indices = @transform_10, window_bounds = array<i64: 1, 32>}, {pipeline_mode = #tpu.pipeline_mode<synchronous>, transform_indices = @transform_11, window_bounds = array<i64: 32, 32>}, {pipeline_mode = #tpu.pipeline_mode<synchronous>, transform_indices = @transform_12, window_bounds = array<i64: 1, 32>}, {pipeline_mode = #tpu.pipeline_mode<synchronous>, transform_indices = @transform_13, window_bounds = array<i64: 8, 32>}, {pipeline_mode = #tpu.pipeline_mode<synchronous>, transform_indices = @transform_14, window_bounds = array<i64: 1, 32>}, {pipeline_mode = #tpu.pipeline_mode<synchronous>, transform_indices = @transform_15, window_bounds = array<i64: 32, 64>}, {pipeline_mode = #tpu.pipeline_mode<synchronous>, transform_indices = @transform_16, window_bounds = array<i64: 32, 64>}, {pipeline_mode = #tpu.pipeline_mode<synchronous>, transform_indices = @transform_17, window_bounds = array<i64: 32, 64>}, {pipeline_mode = #tpu.pipeline_mode<synchronous>, transform_indices = @transform_18, window_bounds = array<i64: 1, 64>}, {pipeline_mode = #tpu.pipeline_mode<synchronous>, transform_indices = @transform_19, window_bounds = array<i64: 64, 8>}, {pipeline_mode = #tpu.pipeline_mode<synchronous>, transform_indices = @transform_20, window_bounds = array<i64: 32, 8>}, {pipeline_mode = #tpu.pipeline_mode<synchronous>, transform_indices = @transform_21, window_bounds = array<i64: 1, 8>}, {pipeline_mode = #tpu.pipeline_mode<synchronous>, transform_indices = @transform_22, window_bounds = array<i64: 2, 8>}]} {
    %c0 = arith.constant 0 : index
    %c0_0 = arith.constant 0 : index
    %0 = vector.load %arg3[%c0, %c0_0] : memref<2x512xbf16, #tpu.memory_space<vmem>>, vector<2x512xbf16>
    %c0_1 = arith.constant 0 : index
    %c0_2 = arith.constant 0 : index
    %1 = vector.load %arg1[%c0_1, %c0_2] : memref<512x36xbf16, #tpu.memory_space<vmem>>, vector<512x36xbf16>
    %c0_3 = arith.constant 0 : index
    %c0_4 = arith.constant 0 : index
    %2 = vector.load %arg6[%c0_3, %c0_4] : memref<36x32xbf16, #tpu.memory_space<vmem>>, vector<36x32xbf16>
    %cst = arith.constant dense<0.000000e+00> : vector<512x32xf32>
    %3 = tpu.matmul %1, %2, %cst {dimension_numbers = #tpu.dot_dimension_numbers<[1], [0], [0], [1], [0, 0, 1, 1], [], []>} : vector<512x36xbf16>, vector<36x32xbf16>, vector<512x32xf32> -> vector<512x32xf32>
    %c0_5 = arith.constant 0 : index
    %c0_6 = arith.constant 0 : index
    %4 = vector.load %arg7[%c0_5, %c0_6] : memref<1x32xf32, #tpu.memory_space<vmem>>, vector<1x32xf32>
    %5 = vector.broadcast %4 : vector<1x32xf32> to vector<512x32xf32>
    %6 = arith.addf %3, %5 : vector<512x32xf32>
    %cst_7 = arith.constant 0.000000e+00 : f32
    %7 = vector.broadcast %cst_7 : f32 to vector<512x32xf32>
    %8 = arith.maximumf %6, %7 : vector<512x32xf32>
    %9 = arith.truncf %8 : vector<512x32xf32> to vector<512x32xbf16>
    %cst_8 = arith.constant dense<0.000000e+00> : vector<2x32xf32>
    %10 = tpu.matmul %0, %9, %cst_8 {dimension_numbers = #tpu.dot_dimension_numbers<[1], [0], [0], [1], [0, 0, 1, 1], [], []>} : vector<2x512xbf16>, vector<512x32xbf16>, vector<2x32xf32> -> vector<2x32xf32>
    %11 = arith.truncf %10 : vector<2x32xf32> to vector<2x32xbf16>
    %c0_9 = arith.constant 0 : index
    %c0_10 = arith.constant 0 : index
    %12 = vector.load %arg10[%c0_9, %c0_10] : memref<32x32xbf16, #tpu.memory_space<vmem>>, vector<32x32xbf16>
    %cst_11 = arith.constant dense<0.000000e+00> : vector<2x32xf32>
    %13 = tpu.matmul %11, %12, %cst_11 {dimension_numbers = #tpu.dot_dimension_numbers<[1], [0], [0], [1], [0, 0, 1, 1], [], []>} : vector<2x32xbf16>, vector<32x32xbf16>, vector<2x32xf32> -> vector<2x32xf32>
    %c0_12 = arith.constant 0 : index
    %c0_13 = arith.constant 0 : index
    %14 = vector.load %arg11[%c0_12, %c0_13] : memref<1x32xf32, #tpu.memory_space<vmem>>, vector<1x32xf32>
    %15 = vector.broadcast %14 : vector<1x32xf32> to vector<2x32xf32>
    %16 = arith.addf %13, %15 : vector<2x32xf32>
    %cst_14 = arith.constant 0.000000e+00 : f32
    %17 = vector.broadcast %cst_14 : f32 to vector<2x32xf32>
    %18 = arith.maximumf %16, %17 : vector<2x32xf32>
    %c0_15 = arith.constant 0 : index
    %c0_16 = arith.constant 0 : index
    %19 = vector.load %arg2[%c0_15, %c0_16] : memref<512x36xbf16, #tpu.memory_space<vmem>>, vector<512x36xbf16>
    %c0_17 = arith.constant 0 : index
    %c0_18 = arith.constant 0 : index
    %20 = vector.load %arg8[%c0_17, %c0_18] : memref<36x32xbf16, #tpu.memory_space<vmem>>, vector<36x32xbf16>
    %cst_19 = arith.constant dense<0.000000e+00> : vector<512x32xf32>
    %21 = tpu.matmul %19, %20, %cst_19 {dimension_numbers = #tpu.dot_dimension_numbers<[1], [0], [0], [1], [0, 0, 1, 1], [], []>} : vector<512x36xbf16>, vector<36x32xbf16>, vector<512x32xf32> -> vector<512x32xf32>
    %c0_20 = arith.constant 0 : index
    %c0_21 = arith.constant 0 : index
    %22 = vector.load %arg9[%c0_20, %c0_21] : memref<1x32xf32, #tpu.memory_space<vmem>>, vector<1x32xf32>
    %23 = vector.broadcast %22 : vector<1x32xf32> to vector<512x32xf32>
    %24 = arith.addf %21, %23 : vector<512x32xf32>
    %cst_22 = arith.constant 0.000000e+00 : f32
    %25 = vector.broadcast %cst_22 : f32 to vector<512x32xf32>
    %26 = arith.maximumf %24, %25 : vector<512x32xf32>
    %27 = arith.truncf %26 : vector<512x32xf32> to vector<512x32xbf16>
    %cst_23 = arith.constant dense<0.000000e+00> : vector<2x32xf32>
    %28 = tpu.matmul %0, %27, %cst_23 {dimension_numbers = #tpu.dot_dimension_numbers<[1], [0], [0], [1], [0, 0, 1, 1], [], []>} : vector<2x512xbf16>, vector<512x32xbf16>, vector<2x32xf32> -> vector<2x32xf32>
    %29 = arith.truncf %28 : vector<2x32xf32> to vector<2x32xbf16>
    %c0_24 = arith.constant 0 : index
    %c0_25 = arith.constant 0 : index
    %30 = vector.load %arg12[%c0_24, %c0_25] : memref<32x32xbf16, #tpu.memory_space<vmem>>, vector<32x32xbf16>
    %cst_26 = arith.constant dense<0.000000e+00> : vector<2x32xf32>
    %31 = tpu.matmul %29, %30, %cst_26 {dimension_numbers = #tpu.dot_dimension_numbers<[1], [0], [0], [1], [0, 0, 1, 1], [], []>} : vector<2x32xbf16>, vector<32x32xbf16>, vector<2x32xf32> -> vector<2x32xf32>
    %c0_27 = arith.constant 0 : index
    %c0_28 = arith.constant 0 : index
    %32 = vector.load %arg13[%c0_27, %c0_28] : memref<1x32xf32, #tpu.memory_space<vmem>>, vector<1x32xf32>
    %33 = vector.broadcast %32 : vector<1x32xf32> to vector<2x32xf32>
    %34 = arith.addf %31, %33 : vector<2x32xf32>
    %cst_29 = arith.constant 0.000000e+00 : f32
    %35 = vector.broadcast %cst_29 : f32 to vector<2x32xf32>
    %36 = arith.maximumf %34, %35 : vector<2x32xf32>
    %c0_30 = arith.constant 0 : index
    %c0_31 = arith.constant 0 : index
    %37 = vector.load %arg4[%c0_30, %c0_31] : memref<2x8xf32, #tpu.memory_space<vmem>>, vector<2x8xf32>
    %38 = arith.truncf %37 : vector<2x8xf32> to vector<2x8xbf16>
    %c0_32 = arith.constant 0 : index
    %c0_33 = arith.constant 0 : index
    %39 = vector.load %arg14[%c0_32, %c0_33] : memref<8x32xbf16, #tpu.memory_space<vmem>>, vector<8x32xbf16>
    %cst_34 = arith.constant dense<0.000000e+00> : vector<2x32xf32>
    %40 = tpu.matmul %38, %39, %cst_34 {dimension_numbers = #tpu.dot_dimension_numbers<[1], [0], [0], [1], [0, 0, 1, 1], [], []>} : vector<2x8xbf16>, vector<8x32xbf16>, vector<2x32xf32> -> vector<2x32xf32>
    %c0_35 = arith.constant 0 : index
    %c0_36 = arith.constant 0 : index
    %41 = vector.load %arg15[%c0_35, %c0_36] : memref<1x32xf32, #tpu.memory_space<vmem>>, vector<1x32xf32>
    %42 = vector.broadcast %41 : vector<1x32xf32> to vector<2x32xf32>
    %43 = arith.addf %40, %42 : vector<2x32xf32>
    %cst_37 = arith.constant 0.000000e+00 : f32
    %44 = vector.broadcast %cst_37 : f32 to vector<2x32xf32>
    %45 = arith.maximumf %43, %44 : vector<2x32xf32>
    %46 = arith.truncf %18 : vector<2x32xf32> to vector<2x32xbf16>
    %c0_38 = arith.constant 0 : index
    %c0_39 = arith.constant 0 : index
    %47 = vector.load %arg16[%c0_38, %c0_39] : memref<32x64xbf16, #tpu.memory_space<vmem>>, vector<32x64xbf16>
    %cst_40 = arith.constant dense<0.000000e+00> : vector<2x64xf32>
    %48 = tpu.matmul %46, %47, %cst_40 {dimension_numbers = #tpu.dot_dimension_numbers<[1], [0], [0], [1], [0, 0, 1, 1], [], []>} : vector<2x32xbf16>, vector<32x64xbf16>, vector<2x64xf32> -> vector<2x64xf32>
    %49 = arith.truncf %36 : vector<2x32xf32> to vector<2x32xbf16>
    %c0_41 = arith.constant 0 : index
    %c0_42 = arith.constant 0 : index
    %50 = vector.load %arg17[%c0_41, %c0_42] : memref<32x64xbf16, #tpu.memory_space<vmem>>, vector<32x64xbf16>
    %cst_43 = arith.constant dense<0.000000e+00> : vector<2x64xf32>
    %51 = tpu.matmul %49, %50, %cst_43 {dimension_numbers = #tpu.dot_dimension_numbers<[1], [0], [0], [1], [0, 0, 1, 1], [], []>} : vector<2x32xbf16>, vector<32x64xbf16>, vector<2x64xf32> -> vector<2x64xf32>
    %52 = arith.addf %48, %51 : vector<2x64xf32>
    %53 = arith.truncf %45 : vector<2x32xf32> to vector<2x32xbf16>
    %c0_44 = arith.constant 0 : index
    %c0_45 = arith.constant 0 : index
    %54 = vector.load %arg18[%c0_44, %c0_45] : memref<32x64xbf16, #tpu.memory_space<vmem>>, vector<32x64xbf16>
    %cst_46 = arith.constant dense<0.000000e+00> : vector<2x64xf32>
    %55 = tpu.matmul %53, %54, %cst_46 {dimension_numbers = #tpu.dot_dimension_numbers<[1], [0], [0], [1], [0, 0, 1, 1], [], []>} : vector<2x32xbf16>, vector<32x64xbf16>, vector<2x64xf32> -> vector<2x64xf32>
    %56 = arith.addf %52, %55 : vector<2x64xf32>
    %c0_47 = arith.constant 0 : index
    %c0_48 = arith.constant 0 : index
    %57 = vector.load %arg19[%c0_47, %c0_48] : memref<1x64xf32, #tpu.memory_space<vmem>>, vector<1x64xf32>
    %58 = vector.broadcast %57 : vector<1x64xf32> to vector<2x64xf32>
    %59 = arith.addf %56, %58 : vector<2x64xf32>
    %cst_49 = arith.constant 0.000000e+00 : f32
    %60 = vector.broadcast %cst_49 : f32 to vector<2x64xf32>
    %61 = arith.maximumf %59, %60 : vector<2x64xf32>
    %62 = arith.truncf %61 : vector<2x64xf32> to vector<2x64xbf16>
    %c0_50 = arith.constant 0 : index
    %c0_51 = arith.constant 0 : index
    %63 = vector.load %arg20[%c0_50, %c0_51] : memref<64x8xbf16, #tpu.memory_space<vmem>>, vector<64x8xbf16>
    %cst_52 = arith.constant dense<0.000000e+00> : vector<2x8xf32>
    %64 = tpu.matmul %62, %63, %cst_52 {dimension_numbers = #tpu.dot_dimension_numbers<[1], [0], [0], [1], [0, 0, 1, 1], [], []>} : vector<2x64xbf16>, vector<64x8xbf16>, vector<2x8xf32> -> vector<2x8xf32>
    %c0_53 = arith.constant 0 : index
    %c0_54 = arith.constant 0 : index
    %65 = vector.load %arg5[%c0_53, %c0_54] : memref<2x32xf32, #tpu.memory_space<vmem>>, vector<2x32xf32>
    %66 = arith.truncf %65 : vector<2x32xf32> to vector<2x32xbf16>
    %c0_55 = arith.constant 0 : index
    %c0_56 = arith.constant 0 : index
    %67 = vector.load %arg21[%c0_55, %c0_56] : memref<32x8xbf16, #tpu.memory_space<vmem>>, vector<32x8xbf16>
    %cst_57 = arith.constant dense<0.000000e+00> : vector<2x8xf32>
    %68 = tpu.matmul %66, %67, %cst_57 {dimension_numbers = #tpu.dot_dimension_numbers<[1], [0], [0], [1], [0, 0, 1, 1], [], []>} : vector<2x32xbf16>, vector<32x8xbf16>, vector<2x8xf32> -> vector<2x8xf32>
    %69 = arith.addf %64, %68 : vector<2x8xf32>
    %c0_58 = arith.constant 0 : index
    %c0_59 = arith.constant 0 : index
    %70 = vector.load %arg22[%c0_58, %c0_59] : memref<1x8xf32, #tpu.memory_space<vmem>>, vector<1x8xf32>
    %71 = vector.broadcast %70 : vector<1x8xf32> to vector<2x8xf32>
    %72 = arith.addf %69, %71 : vector<2x8xf32>
    %c0_60 = arith.constant 0 : index
    %c0_61 = arith.constant 0 : index
    %73 = vector.load %arg23[%c0_60, %c0_61] : memref<2x8xf32, #tpu.memory_space<vmem>>, vector<2x8xf32>
    tpu.vector_store %arg23[%c0_60, %c0_61], %72 {strides = array<i32>} : memref<2x8xf32, #tpu.memory_space<vmem>>, vector<2x8xf32>,
    return
  }
  func.func @transform_0(%arg0: i32) -> (i32, i32) {
    %c0_i32 = arith.constant 0 : i32
    %c0_i32_0 = arith.constant 0 : i32
    %c0_i32_1 = arith.constant 0 : i32
    return %c0_i32, %c0_i32_0 : i32, i32
  }
  func.func @transform_1(%arg0: i32) -> (i32, i32) {
    %c0_i32 = arith.constant 0 : i32
    %c0_i32_0 = arith.constant 0 : i32
    %c0_i32_1 = arith.constant 0 : i32
    return %c0_i32, %c0_i32_0 : i32, i32
  }
  func.func @transform_2(%arg0: i32) -> (i32, i32) {
    %c0_i32 = arith.constant 0 : i32
    %c0_i32_0 = arith.constant 0 : i32
    %c0_i32_1 = arith.constant 0 : i32
    return %c0_i32, %c0_i32_0 : i32, i32
  }
  func.func @transform_3(%arg0: i32) -> (i32, i32) {
    %c0_i32 = arith.constant 0 : i32
    %c0_i32_0 = arith.constant 0 : i32
    %c0_i32_1 = arith.constant 0 : i32
    return %c0_i32, %c0_i32_0 : i32, i32
  }
  func.func @transform_4(%arg0: i32) -> (i32, i32) {
    %c0_i32 = arith.constant 0 : i32
    %c0_i32_0 = arith.constant 0 : i32
    %c0_i32_1 = arith.constant 0 : i32
    return %c0_i32, %c0_i32_0 : i32, i32
  }
  func.func @transform_5(%arg0: i32) -> (i32, i32) {
    %c0_i32 = arith.constant 0 : i32
    %c0_i32_0 = arith.constant 0 : i32
    %c0_i32_1 = arith.constant 0 : i32
    return %c0_i32, %c0_i32_0 : i32, i32
  }
  func.func @transform_6(%arg0: i32) -> (i32, i32) {
    %c0_i32 = arith.constant 0 : i32
    %c0_i32_0 = arith.constant 0 : i32
    %c0_i32_1 = arith.constant 0 : i32
    return %c0_i32, %c0_i32_0 : i32, i32
  }
  func.func @transform_7(%arg0: i32) -> (i32, i32) {
    %c0_i32 = arith.constant 0 : i32
    %c0_i32_0 = arith.constant 0 : i32
    %c0_i32_1 = arith.constant 0 : i32
    return %c0_i32, %c0_i32_0 : i32, i32
  }
  func.func @transform_8(%arg0: i32) -> (i32, i32) {
    %c0_i32 = arith.constant 0 : i32
    %c0_i32_0 = arith.constant 0 : i32
    %c0_i32_1 = arith.constant 0 : i32
    return %c0_i32, %c0_i32_0 : i32, i32
  }
  func.func @transform_9(%arg0: i32) -> (i32, i32) {
    %c0_i32 = arith.constant 0 : i32
    %c0_i32_0 = arith.constant 0 : i32
    %c0_i32_1 = arith.constant 0 : i32
    return %c0_i32, %c0_i32_0 : i32, i32
  }
  func.func @transform_10(%arg0: i32) -> (i32, i32) {
    %c0_i32 = arith.constant 0 : i32
    %c0_i32_0 = arith.constant 0 : i32
    %c0_i32_1 = arith.constant 0 : i32
    return %c0_i32, %c0_i32_0 : i32, i32
  }
  func.func @transform_11(%arg0: i32) -> (i32, i32) {
    %c0_i32 = arith.constant 0 : i32
    %c0_i32_0 = arith.constant 0 : i32
    %c0_i32_1 = arith.constant 0 : i32
    return %c0_i32, %c0_i32_0 : i32, i32
  }
  func.func @transform_12(%arg0: i32) -> (i32, i32) {
    %c0_i32 = arith.constant 0 : i32
    %c0_i32_0 = arith.constant 0 : i32
    %c0_i32_1 = arith.constant 0 : i32
    return %c0_i32, %c0_i32_0 : i32, i32
  }
  func.func @transform_13(%arg0: i32) -> (i32, i32) {
    %c0_i32 = arith.constant 0 : i32
    %c0_i32_0 = arith.constant 0 : i32
    %c0_i32_1 = arith.constant 0 : i32
    return %c0_i32, %c0_i32_0 : i32, i32
  }
  func.func @transform_14(%arg0: i32) -> (i32, i32) {
    %c0_i32 = arith.constant 0 : i32
    %c0_i32_0 = arith.constant 0 : i32
    %c0_i32_1 = arith.constant 0 : i32
    return %c0_i32, %c0_i32_0 : i32, i32
  }
  func.func @transform_15(%arg0: i32) -> (i32, i32) {
    %c0_i32 = arith.constant 0 : i32
    %c0_i32_0 = arith.constant 0 : i32
    %c0_i32_1 = arith.constant 0 : i32
    return %c0_i32, %c0_i32_0 : i32, i32
  }
  func.func @transform_16(%arg0: i32) -> (i32, i32) {
    %c0_i32 = arith.constant 0 : i32
    %c0_i32_0 = arith.constant 0 : i32
    %c0_i32_1 = arith.constant 0 : i32
    return %c0_i32, %c0_i32_0 : i32, i32
  }
  func.func @transform_17(%arg0: i32) -> (i32, i32) {
    %c0_i32 = arith.constant 0 : i32
    %c0_i32_0 = arith.constant 0 : i32
    %c0_i32_1 = arith.constant 0 : i32
    return %c0_i32, %c0_i32_0 : i32, i32
  }
  func.func @transform_18(%arg0: i32) -> (i32, i32) {
    %c0_i32 = arith.constant 0 : i32
    %c0_i32_0 = arith.constant 0 : i32
    %c0_i32_1 = arith.constant 0 : i32
    return %c0_i32, %c0_i32_0 : i32, i32
  }
  func.func @transform_19(%arg0: i32) -> (i32, i32) {
    %c0_i32 = arith.constant 0 : i32
    %c0_i32_0 = arith.constant 0 : i32
    %c0_i32_1 = arith.constant 0 : i32
    return %c0_i32, %c0_i32_0 : i32, i32
  }
  func.func @transform_20(%arg0: i32) -> (i32, i32) {
    %c0_i32 = arith.constant 0 : i32
    %c0_i32_0 = arith.constant 0 : i32
    %c0_i32_1 = arith.constant 0 : i32
    return %c0_i32, %c0_i32_0 : i32, i32
  }
  func.func @transform_21(%arg0: i32) -> (i32, i32) {
    %c0_i32 = arith.constant 0 : i32
    %c0_i32_0 = arith.constant 0 : i32
    %c0_i32_1 = arith.constant 0 : i32
    return %c0_i32, %c0_i32_0 : i32, i32
  }
  func.func @transform_22(%arg0: i32) -> (i32, i32) {
    %c0_i32 = arith.constant 0 : i32
    %c0_i32_0 = arith.constant 0 : i32
    %c0_i32_1 = arith.constant 0 : i32
    return %c0_i32, %c0_i32_0 : i32, i32
  }
}

</mosaic_0001>

<bundles_post_ra>
// kernel: image_angle_net_forward.1
= control target key start
LH: loop header
LB: loop body
LE: loop exit
PB: predicated region body
PF: predicated region fallthrough
CT: control target
= control target key end

     0   :  { %vm324_vm0 = vcmask 293888   ;;  %vm421_vm1 = vcmask 1041408   ;;  %v2918_v36 = vmov 1966171168   ;;  %v822_v38 = vlaneseq  ;;  %s3688_s5 = inlined_call_operand.vmem [shape: bf16[36,32], index: 5, kind: input, shape index: {}]   ;;  %s3689_s0 = inlined_call_operand.vmem [shape: bf16[512,36], index: 0, kind: input, shape index: {}]   ;;  %s3690_s2 = inlined_call_operand.vmem [shape: bf16[2,512], index: 2, kind: input, shape index: {}]   ;;  %s3691_s6 = inlined_call_operand.vmem [shape: f32[1,32], index: 6, kind: input, shape index: {}]   ;;  %s3692_s9 = inlined_call_operand.vmem [shape: bf16[32,32], index: 9, kind: input, shape index: {}]   ;;  %s3693_s7 = inlined_call_operand.vmem [shape: bf16[36,32], index: 7, kind: input, shape index: {}]   ;;  %s3694_s1 = inlined_call_operand.vmem [shape: bf16[512,36], index: 1, kind: input, shape index: {}]   ;;  %s3695_s8 = inlined_call_operand.vmem [shape: f32[1,32], index: 8, kind: input, shape index: {}]   ;;  %s3696_s11 = inlined_call_operand.vmem [shape: bf16[32,32], index: 11, kind: input, shape index: {}]   ;;  %s3697_s13 = inlined_call_operand.vmem [shape: bf16[8,32], index: 13, kind: input, shape index: {}]   ;;  %s3698_s3 = inlined_call_operand.vmem [shape: f32[2,8], index: 3, kind: input, shape index: {}]   ;;  %s3699_s16 = inlined_call_operand.vmem [shape: bf16[32,64], index: 16, kind: input, shape index: {}]   ;;  %s3700_s15 = inlined_call_operand.vmem [shape: bf16[32,64], index: 15, kind: input, shape index: {}]   ;;  %s3701_s17 = inlined_call_operand.vmem [shape: bf16[32,64], index: 17, kind: input, shape index: {}]   ;;  %s3702_s20 = inlined_call_operand.vmem [shape: bf16[32,8], index: 20, kind: input, shape index: {}]   ;;  %s3703_s12 = inlined_call_operand.vmem [shape: f32[1,32], index: 12, kind: input, shape index: {}]   ;;  %s3704_s10 = inlined_call_operand.vmem [shape: f32[1,32], index: 10, kind: input, shape index: {}]   ;;  %s3705_s14 = inlined_call_operand.vmem [shape: f32[1,32], index: 14, kind: input, shape index: {}]   ;;  %s3706_s4 = inlined_call_operand.vmem [shape: f32[2,32], index: 4, kind: input, shape index: {}]   ;;  %s3707_s19 = inlined_call_operand.vmem [shape: bf16[64,8], index: 19, kind: input, shape index: {}]   ;;  %s3708_s18 = inlined_call_operand.vmem [shape: f32[1,64], index: 18, kind: input, shape index: {}]   ;;  %s3709_s21 = inlined_call_operand.vmem [shape: f32[1,8], index: 21, kind: input, shape index: {}]   ;;  %s3710_s22 = inlined_call_operand.vmem [shape: f32[2,8], index: 22, kind: output, shape index: {}]  }
   0x1   :  { %3716 = sst [smem:[#allocation2_spill]] %s3688_s5  ;;  %v820_v37 = vunpack.c.l.s4 %v2918_v36  ;;  %vm2920_vm2 = vmmov 0   ;;  %vm943_vm3 = vcmask 261120   ;;  %vm1885_vm4 = vcmask 1043456  }
   0x2   :  { %3717 = sst [smem:[#allocation3_spill]] %s3689_s0  ;;  %s3723_s29 = sld [smem:[#allocation2_spill]]  ;;  %v823_v40 = vshrl.u32 %v822_v38, 7  ;;  %vm1881_vm5 = vcmask 64512   ;;  %vm2214_vm6 = vcmask 523264   ;;  %vm2266_vm7 = vcmask 58368  }
   0x3   :  { %3718 = sst [smem:[#allocation4_spill]] %s3690_s2  ;;  %s3724_s24 = sld [smem:[#allocation3_spill]]  ;;  %v821_v39 = vunpack.c.0.s8 %v820_v37 }
   0x4   :  { %3719 = sst [smem:[#allocation5_spill]] %s3691_s6  ;;  %s3725_s30 = sld [smem:[#allocation4_spill]] }
   0x5   :  { %3720 = sst [smem:[#allocation6_spill]] %s3692_s9  ;;  %v824_v43 = vsub.s32 %v821_v39, %v823_v40  ;;  %s3726_s5 = sld [smem:[#allocation5_spill]] }
   0x6   :  { %3721 = sst [smem:[#allocation7_spill]] %s3693_s7  ;;  %s3727_s7 = sld [smem:[#allocation6_spill]] }
   0x7   :  { %3722 = sst [smem:[#allocation8_spill]] %s3694_s1  ;;  %s3728_s27 = sld [smem:[#allocation7_spill]] }
   0x8   :  { %v2832_v0 = vld [vmem:[%s3723_s29] sm:$0xff]   ;;  %v2833_v1 = vld [vmem:[%s3723_s29 + $0x8] sm:$0xff]   ;;  %v2834_v2 = vld [vmem:[%s3723_s29 + $0x10] ss:$0 sps:$4 sm:$0x33]   ;;  %s3729_s29 = sld [smem:[#allocation8_spill]] }
   0x9   :  { %2621 = vmatprep.subr.bf16.mxu0 %v2832_v0  ;;  %v2835_v3 = vld [vmem:[%s3724_s24] sm:$0xff]   ;;  %v423_v4 = vsel %vm421_vm1, %v2834_v2, 0  ;;  %v2836_v5 = vld [vmem:[%s3724_s24 + $0x8] sm:$0xff]   ;;  %v2837_v6 = vld [vmem:[%s3724_s24 + $0x10] sm:$0xff]  }
   0xa   :  { %2622 = vmatpush3.bf16.msra.mxu0 %v2832_v0  ;;  %2627 = vmatprep.mubr.msk.bf16.mxu0 %vm324_vm0, %v2835_v3  ;;  %v2838_v7 = vld [vmem:[%s3724_s24 + $0x18] sm:$0xff]   ;;  %v2839_v8 = vld [vmem:[%s3724_s24 + $0x20] sm:$0xff]   ;;  %v2840_v9 = vld [vmem:[%s3724_s24 + $0x28] sm:$0xff]  }
   0xb   :  { %2623 = vmatprep.subr.bf16.mxu0 %v2833_v1  ;;  %v2841_v10 = vld [vmem:[%s3724_s24 + $0x30] sm:$0xff]   ;;  %v2842_v11 = vld [vmem:[%s3724_s24 + $0x38] sm:$0xff]   ;;  %v2843_v12 = vld [vmem:[%s3724_s24 + $0x40] sm:$0xff]  }
   0xc   :  { %v2844_v13 = vld [vmem:[%s3724_s24 + $0x48] sm:$0xff]   ;;  %v2845_v14 = vld [vmem:[%s3724_s24 + $0x50] sm:$0xff]   ;;  %v2846_v15 = vld [vmem:[%s3724_s24 + $0x58] sm:$0xff]  }
   0xd   :  { %v2847_v16 = vld [vmem:[%s3724_s24 + $0x60] sm:$0xff]   ;;  %v2848_v17 = vld [vmem:[%s3724_s24 + $0x68] sm:$0xff]   ;;  %v2849_v18 = vld [vmem:[%s3724_s24 + $0x70] sm:$0xff]  }
   0xe   :  { %2624 = vmatpush3.bf16.msra.mxu0 %v2833_v1  ;;  %v2850_v19 = vld [vmem:[%s3724_s24 + $0x78] sm:$0xff]   ;;  %v2851_v20 = vld [vmem:[%s3724_s24 + $0x80] sm:$0xff]   ;;  %v2852_v21 = vld [vmem:[%s3724_s24 + $0x88] sm:$0xff]  }
   0xf   :  { %2827 = vmatprep.subr.msk.bf16.mxu0 %vm421_vm1, %v2834_v2  ;;  %v2853_v22 = vld [vmem:[%s3724_s24 + $0x90] sm:$0xff]   ;;  %v2854_v23 = vld [vmem:[%s3724_s24 + $0x98] sm:$0xff]   ;;  %v2855_v24 = vld [vmem:[%s3724_s24 + $0xa0] sm:$0xff]  }
  0x10   :  { %v2856_v25 = vld [vmem:[%s3724_s24 + $0xa8] sm:$0xff]   ;;  %v2857_v26 = vld [vmem:[%s3724_s24 + $0xb0] sm:$0xff]   ;;  %v2858_v27 = vld [vmem:[%s3724_s24 + $0xb8] sm:$0xff]  }
  0x11   :  { %v2859_v28 = vld [vmem:[%s3724_s24 + $0xc0] sm:$0xff]   ;;  %v2860_v29 = vld [vmem:[%s3724_s24 + $0xc8] sm:$0xff]   ;;  %v2861_v30 = vld [vmem:[%s3724_s24 + $0xd0] sm:$0xff]  }
  0x12   :  { %2626 = vmatpush3.bf16.msra.mxu0 %v423_v4  ;;  %v2862_v31 = vld [vmem:[%s3724_s24 + $0xd8] sm:$0xff]   ;;  %v2863_v32 = vld [vmem:[%s3724_s24 + $0xe0] sm:$0xff]   ;;  %v2864_v33 = vld [vmem:[%s3724_s24 + $0xe8] sm:$0xff]  }
  0x13   :  { %v2865_v34 = vld [vmem:[%s3724_s24 + $0xf0] sm:$0xff]   ;;  %v2866_v35 = vld [vmem:[%s3724_s24 + $0xf8] sm:$0xff]   ;;  %v2340_v41 = vld.sshfl [vmem:[%s3725_s30] sm:$0x33 pattern:$0x75316420] }
  0x14   :  { %v818_v42 = vcombine.high %v2340_v41, %v2340_v41  ;;  %v3180_v45 = vrot.slane %v2340_v41, %v824_v43  ;;  %v3186_v46 = vld [vmem:[%s3726_s5] ss:$0 sm:$0xff] }
  0x15   :  { %2628 = vmatmul.mubr.msk.bf16.vlgmr.msra.gmra.mrb[0].mxu0 %vm324_vm0, %v2836_v5 }
  0x16   :  { %2631 = vmatprep.mubr.msk.bf16.mxu0 %vm324_vm0, %v2837_v6  ;;  %v3178_v44 = vrot.slane %v818_v42, %v824_v43 }
  0x18   :  { %871 = vmatprep.mubr.bf16.mxu1 %v3178_v44  ;;  %v3196_v60 = vcombine.high %v3178_v44, %v3178_v44 }
  0x1d   :  { %2632 = vmatmul.mubr.msk.bf16.gmra.mrb[4].mxu0 %vm324_vm0, %v2838_v7 }
  0x1e   :  { %2635 = vmatprep.mubr.msk.bf16.mxu0 %vm324_vm0, %v2839_v8 }
  0x25   :  { %2636 = vmatmul.mubr.msk.bf16.gmra.mrb[8].mxu0 %vm324_vm0, %v2840_v9 }
  0x26   :  { %2639 = vmatprep.mubr.msk.bf16.mxu0 %vm324_vm0, %v2841_v10 }
  0x2d   :  { %2640 = vmatmul.mubr.msk.bf16.gmra.mrb[12].mxu0 %vm324_vm0, %v2842_v11 }
  0x2e   :  { %2643 = vmatprep.mubr.msk.bf16.mxu0 %vm324_vm0, %v2843_v12 }
  0x35   :  { %2644 = vmatmul.mubr.msk.bf16.gmra.mrb[16].mxu0 %vm324_vm0, %v2844_v13 }
  0x36   :  { %2647 = vmatprep.mubr.msk.bf16.mxu0 %vm324_vm0, %v2845_v14 }
  0x3d   :  { %2648 = vmatmul.mubr.msk.bf16.gmra.mrb[20].mxu0 %vm324_vm0, %v2846_v15 }
  0x3e   :  { %2651 = vmatprep.mubr.msk.bf16.mxu0 %vm324_vm0, %v2847_v16 }
  0x45   :  { %2652 = vmatmul.mubr.msk.bf16.gmra.mrb[24].mxu0 %vm324_vm0, %v2848_v17 }
  0x46   :  { %2655 = vmatprep.mubr.msk.bf16.mxu0 %vm324_vm0, %v2849_v18 }
  0x4d   :  { %2656 = vmatmul.mubr.msk.bf16.gmra.mrb[28].mxu0 %vm324_vm0, %v2850_v19 }
  0x4e   :  { %2659 = vmatprep.mubr.msk.bf16.mxu0 %vm324_vm0, %v2851_v20 }
  0x55   :  { %2660 = vmatmul.mubr.msk.bf16.gmra.mrb[32].mxu0 %vm324_vm0, %v2852_v21 }
  0x56   :  { %2663 = vmatprep.mubr.msk.bf16.mxu0 %vm324_vm0, %v2853_v22 }
  0x5d   :  { %2664 = vmatmul.mubr.msk.bf16.gmra.mrb[36].mxu0 %vm324_vm0, %v2854_v23 }
  0x5e   :  { %2667 = vmatprep.mubr.msk.bf16.mxu0 %vm324_vm0, %v2855_v24 }
  0x65   :  { %2668 = vmatmul.mubr.msk.bf16.gmra.mrb[40].mxu0 %vm324_vm0, %v2856_v25 }
  0x66   :  { %2671 = vmatprep.mubr.msk.bf16.mxu0 %vm324_vm0, %v2857_v26 }
  0x6d   :  { %2672 = vmatmul.mubr.msk.bf16.gmra.mrb[44].mxu0 %vm324_vm0, %v2858_v27 }
  0x6e   :  { %2675 = vmatprep.mubr.msk.bf16.mxu0 %vm324_vm0, %v2859_v28 }
  0x75   :  { %2676 = vmatmul.mubr.msk.bf16.gmra.mrb[48].mxu0 %vm324_vm0, %v2860_v29 }
  0x76   :  { %2679 = vmatprep.mubr.msk.bf16.mxu0 %vm324_vm0, %v2861_v30 }
  0x7d   :  { %2680 = vmatmul.mubr.msk.bf16.gmra.mrb[52].mxu0 %vm324_vm0, %v2862_v31 }
  0x7e   :  { %2683 = vmatprep.mubr.msk.bf16.mxu0 %vm324_vm0, %v2863_v32 }
  0x85   :  { %2684 = vmatmul.mubr.msk.bf16.gmra.mrb[56].mxu0 %vm324_vm0, %v2864_v33 }
  0x86   :  { %2687 = vmatprep.mubr.msk.bf16.mxu0 %vm324_vm0, %v2865_v34 }
  0x8d   :  { %2688 = vmatmul.mubr.msk.bf16.gmra.mrb[60].mxu0 %vm324_vm0, %v2866_v35 }
  0x8e   :  { %1795 = vmatprep.mubr.bf16.mxu0 %v3196_v60 }
  0xe8   :  { %v2629_v47 = vpop.f32.mrb[0].mxu0 }
  0xe9   :  { %v468_v48 = vadd.f32 %v2629_v47, %v3186_v46  ;;  %v459_v49 = vpop.f32.mrb[1].mxu0 }
  0xea   :  { %v460_v50 = vadd.f32 %v3186_v46, %v459_v49  ;;  %v2630_v51 = vpop.f32.mrb[2].mxu0 }
  0xeb   :  { %v471_v52 = vadd.f32 %v2630_v51, %v3186_v46  ;;  %v462_v53 = vpop.f32.mrb[3].mxu0  ;;  %v716_v55 = vmax.f32 %v468_v48, 0.0 }
  0xec   :  { %v463_v54 = vadd.f32 %v3186_v46, %v462_v53  ;;  %v714_v57 = vmax.f32 %v460_v50, 0.0 }
  0xed   :  { %v717_v56 = vmax.f32 %v471_v52, 0.0 }
  0xee   :  { %v715_v58 = vmax.f32 %v463_v54, 0.0 }
  0xef   :  { %v3192_v59 = vpack.c.bf16 %v717_v56, %v716_v55 }
  0xf0   :  { %v2633_v61 = vpop.f32.mrb[4].mxu0  ;;  %v3198_v62 = vpack.c.bf16 %v715_v58, %v714_v57 }
  0xf1   :  { %v484_v63 = vadd.f32 %v2633_v61, %v3186_v46  ;;  %v475_v0 = vpop.f32.mrb[5].mxu0 }
  0xf2   :  { %v476_v1 = vadd.f32 %v3186_v46, %v475_v0  ;;  %v2634_v2 = vpop.f32.mrb[6].mxu0 }
  0xf3   :  { %v487_v3 = vadd.f32 %v2634_v2, %v3186_v46  ;;  %v478_v4 = vpop.f32.mrb[7].mxu0  ;;  %v720_v6 = vmax.f32 %v484_v63, 0.0 }
  0xf4   :  { %v479_v5 = vadd.f32 %v3186_v46, %v478_v4  ;;  %v718_v8 = vmax.f32 %v476_v1, 0.0 }
  0xf5   :  { %v721_v7 = vmax.f32 %v487_v3, 0.0 }
  0xf6   :  { %v719_v9 = vmax.f32 %v479_v5, 0.0 }
  0xf7   :  { %v3205_v10 = vpack.c.bf16 %v721_v7, %v720_v6 }
  0xf8   :  { %v3207_v11 = vpack.c.bf16 %v719_v9, %v718_v8  ;;  %v2637_v12 = vpop.f32.mrb[8].mxu0 }
  0xf9   :  { %v500_v13 = vadd.f32 %v2637_v12, %v3186_v46  ;;  %v491_v14 = vpop.f32.mrb[9].mxu0 }
  0xfa   :  { %v492_v15 = vadd.f32 %v3186_v46, %v491_v14  ;;  %v2638_v16 = vpop.f32.mrb[10].mxu0 }
  0xfb   :  { %v503_v17 = vadd.f32 %v2638_v16, %v3186_v46  ;;  %v494_v18 = vpop.f32.mrb[11].mxu0  ;;  %v724_v20 = vmax.f32 %v500_v13, 0.0 }
  0xfc   :  { %v495_v19 = vadd.f32 %v3186_v46, %v494_v18  ;;  %v722_v22 = vmax.f32 %v492_v15, 0.0 }
  0xfd   :  { %v725_v21 = vmax.f32 %v503_v17, 0.0 }
  0xfe   :  { %v723_v23 = vmax.f32 %v495_v19, 0.0 }
  0xff   :  { %v3213_v24 = vpack.c.bf16 %v725_v21, %v724_v20 }
 0x100   :  { %v3215_v25 = vpack.c.bf16 %v723_v23, %v722_v22  ;;  %v2641_v26 = vpop.f32.mrb[12].mxu0 }
 0x101   :  { %v516_v27 = vadd.f32 %v2641_v26, %v3186_v46  ;;  %v507_v28 = vpop.f32.mrb[13].mxu0 }
 0x102   :  { %v508_v29 = vadd.f32 %v3186_v46, %v507_v28  ;;  %v2642_v30 = vpop.f32.mrb[14].mxu0 }
 0x103   :  { %v519_v31 = vadd.f32 %v2642_v30, %v3186_v46  ;;  %v510_v32 = vpop.f32.mrb[15].mxu0  ;;  %v728_v34 = vmax.f32 %v516_v27, 0.0 }
 0x104   :  { %v511_v33 = vadd.f32 %v3186_v46, %v510_v32  ;;  %v726_v36 = vmax.f32 %v508_v29, 0.0 }
 0x105   :  { %v729_v35 = vmax.f32 %v519_v31, 0.0 }
 0x106   :  { %v727_v37 = vmax.f32 %v511_v33, 0.0 }
 0x107   :  { %v3221_v38 = vpack.c.bf16 %v729_v35, %v728_v34 }
 0x108   :  { %v3223_v39 = vpack.c.bf16 %v727_v37, %v726_v36  ;;  %v2645_v40 = vpop.f32.mrb[16].mxu0 }
 0x109   :  { %v532_v41 = vadd.f32 %v2645_v40, %v3186_v46  ;;  %v523_v42 = vpop.f32.mrb[17].mxu0 }
 0x10a   :  { %v524_v43 = vadd.f32 %v3186_v46, %v523_v42  ;;  %v2646_v47 = vpop.f32.mrb[18].mxu0 }
 0x10b   :  { %v535_v48 = vadd.f32 %v2646_v47, %v3186_v46  ;;  %v526_v49 = vpop.f32.mrb[19].mxu0  ;;  %v732_v51 = vmax.f32 %v532_v41, 0.0 }
 0x10c   :  { %v527_v50 = vadd.f32 %v3186_v46, %v526_v49  ;;  %v730_v53 = vmax.f32 %v524_v43, 0.0 }
 0x10d   :  { %v733_v52 = vmax.f32 %v535_v48, 0.0 }
 0x10e   :  { %v731_v54 = vmax.f32 %v527_v50, 0.0 }
 0x10f   :  { %v787_v55 = vpack.c.bf16 %v733_v52, %v732_v51 }
 0x110   :  { %v2649_v56 = vpop.f32.mrb[20].mxu0  ;;  %v786_v57 = vpack.c.bf16 %v731_v54, %v730_v53 }
 0x111   :  { %v548_v58 = vadd.f32 %v2649_v56, %v3186_v46  ;;  %v539_v61 = vpop.f32.mrb[21].mxu0 }
 0x112   :  { %v540_v63 = vadd.f32 %v3186_v46, %v539_v61  ;;  %v2650_v0 = vpop.f32.mrb[22].mxu0  ;;  %2473 = vmatprep.subr.bf16.mxu1 %v786_v57 }
 0x113   :  { %v551_v1 = vadd.f32 %v2650_v0, %v3186_v46  ;;  %v542_v2 = vpop.f32.mrb[23].mxu0  ;;  %2474 = vmatpush3.bf16.msra.mxu1 %v3198_v62  ;;  %v736_v4 = vmax.f32 %v548_v58, 0.0 }
 0x114   :  { %v543_v3 = vadd.f32 %v3186_v46, %v542_v2  ;;  %2475 = vmatprep.subr.bf16.mxu1 %v787_v55  ;;  %v734_v6 = vmax.f32 %v540_v63, 0.0 }
 0x115   :  { %v737_v5 = vmax.f32 %v551_v1, 0.0 }
 0x116   :  { %v735_v7 = vmax.f32 %v543_v3, 0.0 }
 0x117   :  { %v789_v8 = vpack.c.bf16 %v737_v5, %v736_v4  ;;  %2476 = vmatpush3.bf16.msra.mxu1 %v3192_v59 }
 0x118   :  { %v788_v9 = vpack.c.bf16 %v735_v7, %v734_v6  ;;  %v2653_v12 = vpop.f32.mrb[24].mxu0 }
 0x119   :  { %v564_v13 = vadd.f32 %v2653_v12, %v3186_v46  ;;  %v555_v14 = vpop.f32.mrb[25].mxu0 }
 0x11a   :  { %v556_v15 = vadd.f32 %v3186_v46, %v555_v14  ;;  %v2654_v16 = vpop.f32.mrb[26].mxu0  ;;  %2477 = vmatprep.subr.bf16.mxu1 %v788_v9 }
 0x11b   :  { %v567_v62 = vadd.f32 %v2654_v16, %v3186_v46  ;;  %v558_v17 = vpop.f32.mrb[27].mxu0  ;;  %2478 = vmatpush3.bf16.msra.mxu1 %v3207_v11  ;;  %v740_v19 = vmax.f32 %v564_v13, 0.0 }
 0x11c   :  { %v559_v18 = vadd.f32 %v3186_v46, %v558_v17  ;;  %2479 = vmatprep.subr.bf16.mxu1 %v789_v8  ;;  %v738_v59 = vmax.f32 %v556_v15, 0.0 }
 0x11d   :  { %v741_v20 = vmax.f32 %v567_v62, 0.0 }
 0x11e   :  { %v739_v21 = vmax.f32 %v559_v18, 0.0 }
 0x11f   :  { %v791_v22 = vpack.c.bf16 %v741_v20, %v740_v19  ;;  %2480 = vmatpush3.bf16.msra.mxu1 %v3205_v10 }
 0x120   :  { %v790_v23 = vpack.c.bf16 %v739_v21, %v738_v59  ;;  %v2657_v26 = vpop.f32.mrb[28].mxu0 }
 0x121   :  { %v580_v27 = vadd.f32 %v2657_v26, %v3186_v46  ;;  %v571_v28 = vpop.f32.mrb[29].mxu0 }
 0x122   :  { %v572_v29 = vadd.f32 %v3186_v46, %v571_v28  ;;  %v2658_v30 = vpop.f32.mrb[30].mxu0  ;;  %2481 = vmatprep.subr.bf16.mxu1 %v790_v23 }
 0x123   :  { %v583_v11 = vadd.f32 %v2658_v30, %v3186_v46  ;;  %v574_v31 = vpop.f32.mrb[31].mxu0  ;;  %2482 = vmatpush3.bf16.msra.mxu1 %v3215_v25  ;;  %v744_v33 = vmax.f32 %v580_v27, 0.0 }
 0x124   :  { %v575_v32 = vadd.f32 %v3186_v46, %v574_v31  ;;  %2483 = vmatprep.subr.bf16.mxu1 %v791_v22  ;;  %v742_v10 = vmax.f32 %v572_v29, 0.0 }
 0x125   :  { %v745_v34 = vmax.f32 %v583_v11, 0.0 }
 0x126   :  { %v743_v35 = vmax.f32 %v575_v32, 0.0 }
 0x127   :  { %v793_v36 = vpack.c.bf16 %v745_v34, %v744_v33  ;;  %2484 = vmatpush3.bf16.msra.mxu1 %v3213_v24 }
 0x128   :  { %v792_v37 = vpack.c.bf16 %v743_v35, %v742_v10  ;;  %v2661_v40 = vpop.f32.mrb[32].mxu0 }
 0x129   :  { %v596_v41 = vadd.f32 %v2661_v40, %v3186_v46  ;;  %v587_v42 = vpop.f32.mrb[33].mxu0 }
 0x12a   :  { %v588_v43 = vadd.f32 %v3186_v46, %v587_v42  ;;  %v2662_v47 = vpop.f32.mrb[34].mxu0  ;;  %2485 = vmatprep.subr.bf16.mxu1 %v792_v37 }
 0x12b   :  { %v599_v25 = vadd.f32 %v2662_v47, %v3186_v46  ;;  %v590_v48 = vpop.f32.mrb[35].mxu0  ;;  %2486 = vmatpush3.bf16.msra.mxu1 %v3223_v39  ;;  %v748_v50 = vmax.f32 %v596_v41, 0.0 }
 0x12c   :  { %v591_v49 = vadd.f32 %v3186_v46, %v590_v48  ;;  %2487 = vmatprep.subr.bf16.mxu1 %v793_v36  ;;  %v746_v24 = vmax.f32 %v588_v43, 0.0 }
 0x12d   :  { %v749_v51 = vmax.f32 %v599_v25, 0.0 }
 0x12e   :  { %v747_v52 = vmax.f32 %v591_v49, 0.0 }
 0x12f   :  { %v3252_v53 = vpack.c.bf16 %v749_v51, %v748_v50  ;;  %2488 = vmatpush3.bf16.msra.mxu1 %v3221_v38 }
 0x130   :  { %v3255_v54 = vpack.c.bf16 %v747_v52, %v746_v24  ;;  %v2665_v55 = vpop.f32.mrb[36].mxu0 }
 0x131   :  { %v612_v56 = vadd.f32 %v2665_v55, %v3186_v46  ;;  %v603_v57 = vpop.f32.mrb[37].mxu0 }
 0x132   :  { %v604_v58 = vadd.f32 %v3186_v46, %v603_v57  ;;  %v2666_v39 = vpop.f32.mrb[38].mxu0  ;;  %872 = vmatmul.mubr.bf16.vlgmr.msra.gmra.mrb[0].mxu1 %v3180_v45 }
 0x133   :  { %v615_v61 = vadd.f32 %v2666_v39, %v3186_v46  ;;  %v606_v63 = vpop.f32.mrb[39].mxu0  ;;  %911 = vmatprep.mubr.bf16.mxu1 %v3196_v60  ;;  %v752_v1 = vmax.f32 %v612_v56, 0.0 }
 0x134   :  { %v607_v0 = vadd.f32 %v3186_v46, %v606_v63  ;;  %v750_v2 = vmax.f32 %v604_v58, 0.0 }
 0x135   :  { %v753_v38 = vmax.f32 %v615_v61, 0.0 }
 0x136   :  { %v751_v3 = vmax.f32 %v607_v0, 0.0 }
 0x137   :  { %v3263_v4 = vpack.c.bf16 %v753_v38, %v752_v1 }
 0x138   :  { %v3265_v5 = vpack.c.bf16 %v751_v3, %v750_v2  ;;  %v2669_v6 = vpop.f32.mrb[40].mxu0 }
 0x139   :  { %v628_v7 = vadd.f32 %v2669_v6, %v3186_v46  ;;  %v619_v8 = vpop.f32.mrb[41].mxu0 }
 0x13a   :  { %v620_v9 = vadd.f32 %v3186_v46, %v619_v8  ;;  %v2670_v12 = vpop.f32.mrb[42].mxu0 }
 0x13b   :  { %v631_v13 = vadd.f32 %v2670_v12, %v3186_v46  ;;  %v622_v60 = vpop.f32.mrb[43].mxu0  ;;  %v756_v15 = vmax.f32 %v628_v7, 0.0 }
 0x13c   :  { %v623_v14 = vadd.f32 %v3186_v46, %v622_v60  ;;  %v754_v62 = vmax.f32 %v620_v9, 0.0 }
 0x13d   :  { %v757_v16 = vmax.f32 %v631_v13, 0.0 }
 0x13e   :  { %v755_v17 = vmax.f32 %v623_v14, 0.0 }
 0x13f   :  { %v3271_v18 = vpack.c.bf16 %v757_v16, %v756_v15 }
 0x140   :  { %v3273_v19 = vpack.c.bf16 %v755_v17, %v754_v62  ;;  %v2673_v20 = vpop.f32.mrb[44].mxu0 }
 0x141   :  { %v644_v59 = vadd.f32 %v2673_v20, %v3186_v46  ;;  %v635_v21 = vpop.f32.mrb[45].mxu0 }
 0x142   :  { %v636_v22 = vadd.f32 %v3186_v46, %v635_v21  ;;  %v2674_v23 = vpop.f32.mrb[46].mxu0 }
 0x143   :  { %v647_v26 = vadd.f32 %v2674_v23, %v3186_v46  ;;  %v638_v27 = vpop.f32.mrb[47].mxu0  ;;  %v760_v29 = vmax.f32 %v644_v59, 0.0 }
 0x144   :  { %v639_v28 = vadd.f32 %v3186_v46, %v638_v27  ;;  %v758_v11 = vmax.f32 %v636_v22, 0.0 }
 0x145   :  { %v761_v30 = vmax.f32 %v647_v26, 0.0 }
 0x146   :  { %v759_v31 = vmax.f32 %v639_v28, 0.0 }
 0x147   :  { %v3279_v32 = vpack.c.bf16 %v761_v30, %v760_v29 }
 0x148   :  { %v3281_v33 = vpack.c.bf16 %v759_v31, %v758_v11  ;;  %v2677_v34 = vpop.f32.mrb[48].mxu0  ;;  %v3308_v31 = vcombine.high %v3180_v45, %v3180_v45 }
 0x149   :  { %v660_v10 = vadd.f32 %v2677_v34, %v3186_v46  ;;  %v651_v35 = vpop.f32.mrb[49].mxu0 }
 0x14a   :  { %v652_v36 = vadd.f32 %v3186_v46, %v651_v35  ;;  %v2678_v37 = vpop.f32.mrb[50].mxu0 }
 0x14b   :  { %v663_v40 = vadd.f32 %v2678_v37, %v3186_v46  ;;  %v654_v41 = vpop.f32.mrb[51].mxu0  ;;  %v764_v43 = vmax.f32 %v660_v10, 0.0 }
 0x14c   :  { %v655_v42 = vadd.f32 %v3186_v46, %v654_v41  ;;  %v762_v25 = vmax.f32 %v652_v36, 0.0 }
 0x14d   :  { %v765_v47 = vmax.f32 %v663_v40, 0.0 }
 0x14e   :  { %v763_v48 = vmax.f32 %v655_v42, 0.0 }
 0x14f   :  { %v803_v49 = vpack.c.bf16 %v765_v47, %v764_v43 }
 0x150   :  { %v802_v50 = vpack.c.bf16 %v763_v48, %v762_v25  ;;  %v2681_v51 = vpop.f32.mrb[52].mxu0  ;;  %v2872_v25 = vld [vmem:[%s3729_s29] sm:$0xff]  }
 0x151   :  { %v676_v24 = vadd.f32 %v2681_v51, %v3186_v46  ;;  %v667_v52 = vpop.f32.mrb[53].mxu0 }
 0x152   :  { %v668_v55 = vadd.f32 %v3186_v46, %v667_v52  ;;  %v2682_v56 = vpop.f32.mrb[54].mxu0  ;;  %2495 = vmatprep.subr.bf16.mxu1 %v802_v50  ;;  %v2871_v50 = vld [vmem:[%s3728_s27 + $0x10] ss:$0 sps:$4 sm:$0x33]  }
 0x153   :  { %v679_v57 = vadd.f32 %v2682_v56, %v3186_v46  ;;  %v670_v58 = vpop.f32.mrb[55].mxu0  ;;  %2496 = vmatpush3.bf16.msra.mxu1 %v3255_v54  ;;  %v768_v61 = vmax.f32 %v676_v24, 0.0  ;;  %v1336_v51 = vsel %vm421_vm1, %v2871_v50, 0  ;;  %v2873_v24 = vld [vmem:[%s3729_s29 + $0x8] sm:$0xff]   ;;  %v2874_v52 = vld [vmem:[%s3729_s29 + $0x10] sm:$0xff]   ;;  %v2876_v56 = vld [vmem:[%s3729_s29 + $0x20] sm:$0xff]  }
 0x154   :  { %v671_v39 = vadd.f32 %v3186_v46, %v670_v58  ;;  %2497 = vmatprep.subr.bf16.mxu1 %v803_v49  ;;  %v766_v0 = vmax.f32 %v668_v55, 0.0  ;;  %v2870_v49 = vld [vmem:[%s3728_s27 + $0x8] sm:$0xff]   ;;  %v2875_v55 = vld [vmem:[%s3729_s29 + $0x18] sm:$0xff]   ;;  %v2878_v58 = vld [vmem:[%s3729_s29 + $0x30] sm:$0xff]  }
 0x155   :  { %v769_v63 = vmax.f32 %v679_v57, 0.0  ;;  %v2877_v57 = vld [vmem:[%s3729_s29 + $0x28] sm:$0xff]  }
 0x156   :  { %v767_v1 = vmax.f32 %v671_v39, 0.0  ;;  %v2879_v39 = vld [vmem:[%s3729_s29 + $0x38] sm:$0xff]  }
 0x157   :  { %v805_v38 = vpack.c.bf16 %v769_v63, %v768_v61  ;;  %2498 = vmatpush3.bf16.msra.mxu1 %v3252_v53  ;;  %v2880_v61 = vld [vmem:[%s3729_s29 + $0x40] sm:$0xff]   ;;  %v2881_v63 = vld [vmem:[%s3729_s29 + $0x48] sm:$0xff]  }
 0x158   :  { %v804_v2 = vpack.c.bf16 %v767_v1, %v766_v0  ;;  %v2685_v3 = vpop.f32.mrb[56].mxu0  ;;  %v2882_v0 = vld [vmem:[%s3729_s29 + $0x50] sm:$0xff]   ;;  %v2883_v1 = vld [vmem:[%s3729_s29 + $0x58] sm:$0xff]  }
 0x159   :  { %v692_v6 = vadd.f32 %v2685_v3, %v3186_v46  ;;  %v683_v7 = vpop.f32.mrb[57].mxu0  ;;  %v2886_v3 = vld [vmem:[%s3729_s29 + $0x70] sm:$0xff]  }
 0x15a   :  { %v684_v8 = vadd.f32 %v3186_v46, %v683_v7  ;;  %v2686_v9 = vpop.f32.mrb[58].mxu0  ;;  %2499 = vmatprep.subr.bf16.mxu1 %v804_v2  ;;  %v2885_v2 = vld [vmem:[%s3729_s29 + $0x68] sm:$0xff]   ;;  %v2888_v7 = vld [vmem:[%s3729_s29 + $0x80] sm:$0xff]  }
 0x15b   :  { %v695_v54 = vadd.f32 %v2686_v9, %v3186_v46  ;;  %v686_v12 = vpop.f32.mrb[59].mxu0  ;;  %2500 = vmatpush3.bf16.msra.mxu1 %v3265_v5  ;;  %v772_v60 = vmax.f32 %v692_v6, 0.0  ;;  %v2887_v6 = vld [vmem:[%s3729_s29 + $0x78] sm:$0xff]   ;;  %v2890_v9 = vld [vmem:[%s3729_s29 + $0x90] sm:$0xff]  }
 0x15c   :  { %v687_v13 = vadd.f32 %v3186_v46, %v686_v12  ;;  %2501 = vmatprep.subr.bf16.mxu1 %v805_v38  ;;  %v770_v53 = vmax.f32 %v684_v8, 0.0  ;;  %v2884_v38 = vld [vmem:[%s3729_s29 + $0x60] sm:$0xff]   ;;  %v2889_v8 = vld [vmem:[%s3729_s29 + $0x88] sm:$0xff]  }
 0x15d   :  { %v773_v14 = vmax.f32 %v695_v54, 0.0  ;;  %v2891_v54 = vld [vmem:[%s3729_s29 + $0x98] sm:$0xff]   ;;  %v2892_v12 = vld [vmem:[%s3729_s29 + $0xa0] sm:$0xff]  }
 0x15e   :  { %v771_v15 = vmax.f32 %v687_v13, 0.0  ;;  %v2893_v13 = vld [vmem:[%s3729_s29 + $0xa8] sm:$0xff]  }
 0x15f   :  { %v807_v16 = vpack.c.bf16 %v773_v14, %v772_v60  ;;  %2502 = vmatpush3.bf16.msra.mxu1 %v3263_v4  ;;  %v2894_v60 = vld [vmem:[%s3729_s29 + $0xb0] sm:$0xff]   ;;  %v2895_v14 = vld [vmem:[%s3729_s29 + $0xb8] sm:$0xff]  }
 0x160   :  { %v806_v62 = vpack.c.bf16 %v771_v15, %v770_v53  ;;  %v2689_v17 = vpop.f32.mrb[60].mxu0  ;;  %v2896_v53 = vld [vmem:[%s3729_s29 + $0xc0] sm:$0xff]   ;;  %v2897_v15 = vld [vmem:[%s3729_s29 + $0xc8] sm:$0xff]  }
 0x161   :  { %v708_v20 = vadd.f32 %v2689_v17, %v3186_v46  ;;  %v699_v59 = vpop.f32.mrb[61].mxu0  ;;  %v2900_v17 = vld [vmem:[%s3729_s29 + $0xe0] sm:$0xff]  }
 0x162   :  { %v700_v21 = vadd.f32 %v3186_v46, %v699_v59  ;;  %v2690_v22 = vpop.f32.mrb[62].mxu0  ;;  %2503 = vmatprep.subr.bf16.mxu1 %v806_v62  ;;  %v2899_v62 = vld [vmem:[%s3729_s29 + $0xd8] sm:$0xff]   ;;  %v2902_v59 = vld [vmem:[%s3729_s29 + $0xf0] sm:$0xff]  }
 0x163   :  { %v711_v5 = vadd.f32 %v2690_v22, %v3186_v46  ;;  %v702_v23 = vpop.f32.mrb[63].mxu0  ;;  %2504 = vmatpush3.bf16.msra.mxu1 %v3273_v19  ;;  %v776_v27 = vmax.f32 %v708_v20, 0.0  ;;  %v2868_v19 = vld [vmem:[%s3727_s7 + $0x8] sm:$0xff]  }
 0x164   :  { %v703_v26 = vadd.f32 %v3186_v46, %v702_v23  ;;  %2505 = vmatprep.subr.bf16.mxu1 %v807_v16  ;;  %v774_v4 = vmax.f32 %v700_v21, 0.0  ;;  %v2919_v46 = vmov 0.0   ;;  %v2898_v16 = vld [vmem:[%s3729_s29 + $0xd0] sm:$0xff]   ;;  %v2901_v20 = vld [vmem:[%s3729_s29 + $0xe8] sm:$0xff]   ;;  %v2903_v21 = vld [vmem:[%s3729_s29 + $0xf8] sm:$0xff]  }
 0x165   :  { %v777_v28 = vmax.f32 %v711_v5, 0.0 }
 0x166   :  { %v775_v29 = vmax.f32 %v703_v26, 0.0 }
 0x167   :  { %v809_v30 = vpack.c.bf16 %v777_v28, %v776_v27  ;;  %2506 = vmatpush3.bf16.msra.mxu1 %v3271_v18  ;;  %v2867_v18 = vld [vmem:[%s3727_s7] sm:$0xff]  }
 0x168   :  { %v808_v11 = vpack.c.bf16 %v775_v29, %v774_v4  ;;  %v3468_v27 = vld [vmem:[%s3695_s8] ss:$0 sm:$0xff] }
 0x16a   :  { %2507 = vmatprep.subr.bf16.mxu1 %v808_v11 }
 0x16b   :  { %2508 = vmatpush3.bf16.msra.mxu1 %v3281_v33 }
 0x16c   :  { %2509 = vmatprep.subr.bf16.mxu1 %v809_v30 }
 0x16f   :  { %2510 = vmatpush3.bf16.msra.mxu1 %v3279_v32  ;;  %v2869_v32 = vld [vmem:[%s3728_s27] sm:$0xff]  }
 0x170   :  { %2691 = vmatprep.subr.bf16.mxu1 %v2919_v46 }
 0x172   :  { %912 = vmatmul.mubr.bf16.vlgmr.msra.gmra.mrb[4].mxu1 %v3308_v31 }
 0x173   :  { %2692 = vmatpush3.bf16.msra.mxu1 %v2867_v18  ;;  %2695 = vmatprep.mubr.msk.bf16.mxu1 %vm2920_vm2, %v2919_v46 }
 0x174   :  { %2693 = vmatprep.subr.bf16.mxu1 %v2919_v46 }
 0x177   :  { %2694 = vmatpush3.bf16.msra.mxu1 %v2868_v19 }
 0x178   :  { %2699 = vmatprep.subr.bf16.mxu1 %v2869_v32 }
 0x205   :  { %v2489_v33 = vpop.f32.mrb[0].mxu1 }
 0x206   :  { %v2490_v34 = vpop.f32.mrb[1].mxu1 }
 0x207   :  { %v2491_v10 = vadd.f32 %v2490_v34, %v2489_v33  ;;  %v2492_v35 = vpop.f32.mrb[2].mxu1 }
 0x208   :  { %v2493_v36 = vpop.f32.mrb[3].mxu1 }
 0x245   :  { %v2511_v37 = vpop.f32.mrb[4].mxu1 }
 0x246   :  { %v2512_v40 = vpop.f32.mrb[5].mxu1 }
 0x247   :  { %v2513_v41 = vadd.f32 %v2512_v40, %v2511_v37  ;;  %v2514_v42 = vpop.f32.mrb[6].mxu1 }
 0x248   :  { %v2515_v43 = vpop.f32.mrb[7].mxu1 }
 0x249   :  { %v914_v47 = vadd.f32 %v2513_v41, %v2491_v10 }
 0x24b   :  { %v919_v48 = vpack.c.bf16 %v914_v47, %v914_v47 }
 0x24d   :  { %2696 = vmatmul.mubr.msk.bf16.vlgmr.msra.gmra.mrb[8].mxu1 %vm943_vm3, %v919_v48 }
 0x24e   :  { %2700 = vmatpush3.bf16.msra.mxu1 %v2869_v32  ;;  %2705 = vmatprep.mubr.msk.bf16.mxu1 %vm324_vm0, %v2872_v25 }
 0x24f   :  { %2701 = vmatprep.subr.bf16.mxu1 %v2870_v49 }
 0x252   :  { %2702 = vmatpush3.bf16.msra.mxu1 %v2870_v49 }
 0x253   :  { %2828 = vmatprep.subr.msk.bf16.mxu1 %vm421_vm1, %v2871_v50 }
 0x256   :  { %2704 = vmatpush3.bf16.msra.mxu1 %v1336_v51 }
 0x259   :  { %2706 = vmatmul.mubr.msk.bf16.vlgmr.msra.gmra.mrb[12].mxu1 %vm324_vm0, %v2873_v24 }
 0x25a   :  { %2709 = vmatprep.mubr.msk.bf16.mxu1 %vm324_vm0, %v2874_v52 }
 0x261   :  { %2710 = vmatmul.mubr.msk.bf16.gmra.mrb[16].mxu1 %vm324_vm0, %v2875_v55 }
 0x262   :  { %2713 = vmatprep.mubr.msk.bf16.mxu1 %vm324_vm0, %v2876_v56 }
 0x269   :  { %2714 = vmatmul.mubr.msk.bf16.gmra.mrb[20].mxu1 %vm324_vm0, %v2877_v57 }
 0x26a   :  { %2717 = vmatprep.mubr.msk.bf16.mxu1 %vm324_vm0, %v2878_v58 }
 0x271   :  { %2718 = vmatmul.mubr.msk.bf16.gmra.mrb[24].mxu1 %vm324_vm0, %v2879_v39 }
 0x272   :  { %2721 = vmatprep.mubr.msk.bf16.mxu1 %vm324_vm0, %v2880_v61 }
 0x279   :  { %2722 = vmatmul.mubr.msk.bf16.gmra.mrb[28].mxu1 %vm324_vm0, %v2881_v63 }
 0x27a   :  { %2725 = vmatprep.mubr.msk.bf16.mxu1 %vm324_vm0, %v2882_v0 }
 0x281   :  { %2726 = vmatmul.mubr.msk.bf16.gmra.mrb[32].mxu1 %vm324_vm0, %v2883_v1 }
 0x282   :  { %2729 = vmatprep.mubr.msk.bf16.mxu1 %vm324_vm0, %v2884_v38 }
 0x289   :  { %2730 = vmatmul.mubr.msk.bf16.gmra.mrb[36].mxu1 %vm324_vm0, %v2885_v2 }
 0x28a   :  { %2733 = vmatprep.mubr.msk.bf16.mxu1 %vm324_vm0, %v2886_v3 }
 0x291   :  { %2734 = vmatmul.mubr.msk.bf16.gmra.mrb[40].mxu1 %vm324_vm0, %v2887_v6 }
 0x292   :  { %2737 = vmatprep.mubr.msk.bf16.mxu1 %vm324_vm0, %v2888_v7 }
 0x299   :  { %2738 = vmatmul.mubr.msk.bf16.gmra.mrb[44].mxu1 %vm324_vm0, %v2889_v8 }
 0x29a   :  { %2741 = vmatprep.mubr.msk.bf16.mxu1 %vm324_vm0, %v2890_v9 }
 0x2a1   :  { %2742 = vmatmul.mubr.msk.bf16.gmra.mrb[48].mxu1 %vm324_vm0, %v2891_v54 }
 0x2a2   :  { %2745 = vmatprep.mubr.msk.bf16.mxu1 %vm324_vm0, %v2892_v12 }
 0x2a9   :  { %2746 = vmatmul.mubr.msk.bf16.gmra.mrb[52].mxu1 %vm324_vm0, %v2893_v13 }
 0x2aa   :  { %2749 = vmatprep.mubr.msk.bf16.mxu1 %vm324_vm0, %v2894_v60 }
 0x2b1   :  { %2750 = vmatmul.mubr.msk.bf16.gmra.mrb[56].mxu1 %vm324_vm0, %v2895_v14 }
 0x2b2   :  { %2753 = vmatprep.mubr.msk.bf16.mxu1 %vm324_vm0, %v2896_v53 }
 0x2b9   :  { %2754 = vmatmul.mubr.msk.bf16.gmra.mrb[60].mxu1 %vm324_vm0, %v2897_v15 }
 0x2ba   :  { %2757 = vmatprep.mubr.msk.bf16.mxu1 %vm324_vm0, %v2898_v16 }
 0x2c1   :  { %2758 = vmatmul.mubr.msk.bf16.gmra.mrb[64].mxu1 %vm324_vm0, %v2899_v62 }
 0x2c2   :  { %2761 = vmatprep.mubr.msk.bf16.mxu1 %vm324_vm0, %v2900_v17 }
 0x2c9   :  { %2762 = vmatmul.mubr.msk.bf16.gmra.mrb[68].mxu1 %vm324_vm0, %v2901_v20 }
 0x2ca   :  { %2765 = vmatprep.mubr.msk.bf16.mxu1 %vm324_vm0, %v2902_v59 }
 0x2d1   :  { %2766 = vmatmul.mubr.msk.bf16.gmra.mrb[72].mxu1 %vm324_vm0, %v2903_v21 }
 0x2d2   :  { %1755 = vmatprep.mubr.bf16.mxu1 %v3178_v44 }
 0x320   :  { %v3463_v22 = vpop.f32.mrb[8].mxu1 }
 0x321   :  { %v2697_v5 = vpop.f32.mrb[9].mxu1 }
 0x322   :  { %v984_v23 = vpop.f32.mrb[10].mxu1 }
 0x323   :  { %v2698_v26 = vpop.f32.mrb[11].mxu1 }
 0x32c   :  { %v2707_v28 = vpop.f32.mrb[12].mxu1 }
 0x32d   :  { %v1381_v4 = vadd.f32 %v2707_v28, %v3468_v27  ;;  %v1372_v29 = vpop.f32.mrb[13].mxu1 }
 0x32e   :  { %v1373_v30 = vadd.f32 %v3468_v27, %v1372_v29  ;;  %v2708_v11 = vpop.f32.mrb[14].mxu1 }
 0x32f   :  { %v1384_v18 = vadd.f32 %v2708_v11, %v3468_v27  ;;  %v1375_v44 = vpop.f32.mrb[15].mxu1  ;;  %v1629_v32 = vmax.f32 %v1381_v4, 0.0 }
 0x330   :  { %v1376_v19 = vadd.f32 %v3468_v27, %v1375_v44  ;;  %v1627_v34 = vmax.f32 %v1373_v30, 0.0 }
 0x331   :  { %v1630_v33 = vmax.f32 %v1384_v18, 0.0 }
 0x332   :  { %v1628_v10 = vmax.f32 %v1376_v19, 0.0 }
 0x333   :  { %v3474_v35 = vpack.c.bf16 %v1630_v33, %v1629_v32 }
 0x334   :  { %v3476_v36 = vpack.c.bf16 %v1628_v10, %v1627_v34  ;;  %v2711_v37 = vpop.f32.mrb[16].mxu1 }
 0x335   :  { %v1397_v40 = vadd.f32 %v2711_v37, %v3468_v27  ;;  %v1388_v41 = vpop.f32.mrb[17].mxu1 }
 0x336   :  { %v1389_v42 = vadd.f32 %v3468_v27, %v1388_v41  ;;  %v2712_v43 = vpop.f32.mrb[18].mxu1 }
 0x337   :  { %v1400_v47 = vadd.f32 %v2712_v43, %v3468_v27  ;;  %v1391_v25 = vpop.f32.mrb[19].mxu1  ;;  %v1633_v49 = vmax.f32 %v1397_v40, 0.0 }
 0x338   :  { %v1392_v48 = vadd.f32 %v3468_v27, %v1391_v25  ;;  %v1631_v51 = vmax.f32 %v1389_v42, 0.0 }
 0x339   :  { %v1634_v50 = vmax.f32 %v1400_v47, 0.0 }
 0x33a   :  { %v1632_v24 = vmax.f32 %v1392_v48, 0.0 }
 0x33b   :  { %v3482_v52 = vpack.c.bf16 %v1634_v50, %v1633_v49 }
 0x33c   :  { %v3484_v55 = vpack.c.bf16 %v1632_v24, %v1631_v51  ;;  %v2715_v56 = vpop.f32.mrb[20].mxu1 }
 0x33d   :  { %v1413_v57 = vadd.f32 %v2715_v56, %v3468_v27  ;;  %v1404_v58 = vpop.f32.mrb[21].mxu1 }
 0x33e   :  { %v1405_v39 = vadd.f32 %v3468_v27, %v1404_v58  ;;  %v2716_v61 = vpop.f32.mrb[22].mxu1 }
 0x33f   :  { %v1416_v63 = vadd.f32 %v2716_v61, %v3468_v27  ;;  %v1407_v0 = vpop.f32.mrb[23].mxu1  ;;  %v1637_v38 = vmax.f32 %v1413_v57, 0.0 }
 0x340   :  { %v1408_v1 = vadd.f32 %v3468_v27, %v1407_v0  ;;  %v1635_v3 = vmax.f32 %v1405_v39, 0.0 }
 0x341   :  { %v1638_v2 = vmax.f32 %v1416_v63, 0.0 }
 0x342   :  { %v1636_v6 = vmax.f32 %v1408_v1, 0.0 }
 0x343   :  { %v3490_v7 = vpack.c.bf16 %v1638_v2, %v1637_v38 }
 0x344   :  { %v3492_v8 = vpack.c.bf16 %v1636_v6, %v1635_v3  ;;  %v2719_v9 = vpop.f32.mrb[24].mxu1 }
 0x345   :  { %v1429_v54 = vadd.f32 %v2719_v9, %v3468_v27  ;;  %v1420_v12 = vpop.f32.mrb[25].mxu1 }
 0x346   :  { %v1421_v13 = vadd.f32 %v3468_v27, %v1420_v12  ;;  %v2720_v60 = vpop.f32.mrb[26].mxu1 }
 0x347   :  { %v1432_v14 = vadd.f32 %v2720_v60, %v3468_v27  ;;  %v1423_v53 = vpop.f32.mrb[27].mxu1  ;;  %v1641_v16 = vmax.f32 %v1429_v54, 0.0 }
 0x348   :  { %v1424_v15 = vadd.f32 %v3468_v27, %v1423_v53  ;;  %v1639_v17 = vmax.f32 %v1421_v13, 0.0 }
 0x349   :  { %v1642_v62 = vmax.f32 %v1432_v14, 0.0 }
 0x34a   :  { %v1640_v20 = vmax.f32 %v1424_v15, 0.0 }
 0x34b   :  { %v3498_v59 = vpack.c.bf16 %v1642_v62, %v1641_v16 }
 0x34c   :  { %v3500_v21 = vpack.c.bf16 %v1640_v20, %v1639_v17  ;;  %v2723_v5 = vpop.f32.mrb[28].mxu1 }
 0x34d   :  { %v1445_v23 = vadd.f32 %v2723_v5, %v3468_v27  ;;  %v1436_v26 = vpop.f32.mrb[29].mxu1 }
 0x34e   :  { %v1437_v28 = vadd.f32 %v3468_v27, %v1436_v26  ;;  %v2724_v4 = vpop.f32.mrb[30].mxu1 }
 0x34f   :  { %v1448_v29 = vadd.f32 %v2724_v4, %v3468_v27  ;;  %v1439_v30 = vpop.f32.mrb[31].mxu1  ;;  %v1645_v18 = vmax.f32 %v1445_v23, 0.0 }
 0x350   :  { %v1440_v11 = vadd.f32 %v3468_v27, %v1439_v30  ;;  %v1643_v19 = vmax.f32 %v1437_v28, 0.0 }
 0x351   :  { %v1646_v44 = vmax.f32 %v1448_v29, 0.0 }
 0x352   :  { %v1644_v32 = vmax.f32 %v1440_v11, 0.0 }
 0x353   :  { %v1700_v33 = vpack.c.bf16 %v1646_v44, %v1645_v18 }
 0x354   :  { %v1699_v34 = vpack.c.bf16 %v1644_v32, %v1643_v19  ;;  %v2727_v10 = vpop.f32.mrb[32].mxu1 }
 0x355   :  { %v1461_v37 = vadd.f32 %v2727_v10, %v3468_v27  ;;  %v1452_v40 = vpop.f32.mrb[33].mxu1 }
 0x356   :  { %v1453_v41 = vadd.f32 %v3468_v27, %v1452_v40  ;;  %v2728_v42 = vpop.f32.mrb[34].mxu1  ;;  %2555 = vmatprep.subr.bf16.mxu1 %v1699_v34 }
 0x357   :  { %v1464_v43 = vadd.f32 %v2728_v42, %v3468_v27  ;;  %v1455_v47 = vpop.f32.mrb[35].mxu1  ;;  %2556 = vmatpush3.bf16.msra.mxu1 %v3476_v36  ;;  %v1649_v48 = vmax.f32 %v1461_v37, 0.0 }
 0x358   :  { %v1456_v25 = vadd.f32 %v3468_v27, %v1455_v47  ;;  %2557 = vmatprep.subr.bf16.mxu1 %v1700_v33  ;;  %v1647_v50 = vmax.f32 %v1453_v41, 0.0 }
 0x359   :  { %v1650_v49 = vmax.f32 %v1464_v43, 0.0 }
 0x35a   :  { %v1648_v51 = vmax.f32 %v1456_v25, 0.0 }
 0x35b   :  { %v1702_v24 = vpack.c.bf16 %v1650_v49, %v1649_v48  ;;  %2558 = vmatpush3.bf16.msra.mxu1 %v3474_v35 }
 0x35c   :  { %v1701_v56 = vpack.c.bf16 %v1648_v51, %v1647_v50  ;;  %v2731_v57 = vpop.f32.mrb[36].mxu1 }
 0x35d   :  { %v1477_v58 = vadd.f32 %v2731_v57, %v3468_v27  ;;  %v1468_v39 = vpop.f32.mrb[37].mxu1 }
 0x35e   :  { %v1469_v61 = vadd.f32 %v3468_v27, %v1468_v39  ;;  %v2732_v63 = vpop.f32.mrb[38].mxu1  ;;  %2559 = vmatprep.subr.bf16.mxu1 %v1701_v56 }
 0x35f   :  { %v1480_v36 = vadd.f32 %v2732_v63, %v3468_v27  ;;  %v1471_v0 = vpop.f32.mrb[39].mxu1  ;;  %2560 = vmatpush3.bf16.msra.mxu1 %v3484_v55  ;;  %v1653_v38 = vmax.f32 %v1477_v58, 0.0 }
 0x360   :  { %v1472_v1 = vadd.f32 %v3468_v27, %v1471_v0  ;;  %2561 = vmatprep.subr.bf16.mxu1 %v1702_v24  ;;  %v1651_v35 = vmax.f32 %v1469_v61, 0.0 }
 0x361   :  { %v1654_v2 = vmax.f32 %v1480_v36, 0.0 }
 0x362   :  { %v1652_v3 = vmax.f32 %v1472_v1, 0.0 }
 0x363   :  { %v1704_v6 = vpack.c.bf16 %v1654_v2, %v1653_v38  ;;  %2562 = vmatpush3.bf16.msra.mxu1 %v3482_v52 }
 0x364   :  { %v1703_v9 = vpack.c.bf16 %v1652_v3, %v1651_v35  ;;  %v2735_v54 = vpop.f32.mrb[40].mxu1 }
 0x365   :  { %v1493_v12 = vadd.f32 %v2735_v54, %v3468_v27  ;;  %v1484_v13 = vpop.f32.mrb[41].mxu1 }
 0x366   :  { %v1485_v60 = vadd.f32 %v3468_v27, %v1484_v13  ;;  %v2736_v14 = vpop.f32.mrb[42].mxu1  ;;  %2563 = vmatprep.subr.bf16.mxu1 %v1703_v9 }
 0x367   :  { %v1496_v55 = vadd.f32 %v2736_v14, %v3468_v27  ;;  %v1487_v53 = vpop.f32.mrb[43].mxu1  ;;  %2564 = vmatpush3.bf16.msra.mxu1 %v3492_v8  ;;  %v1657_v16 = vmax.f32 %v1493_v12, 0.0 }
 0x368   :  { %v1488_v15 = vadd.f32 %v3468_v27, %v1487_v53  ;;  %2565 = vmatprep.subr.bf16.mxu1 %v1704_v6  ;;  %v1655_v52 = vmax.f32 %v1485_v60, 0.0 }
 0x369   :  { %v1658_v62 = vmax.f32 %v1496_v55, 0.0 }
 0x36a   :  { %v1656_v17 = vmax.f32 %v1488_v15, 0.0 }
 0x36b   :  { %v1706_v20 = vpack.c.bf16 %v1658_v62, %v1657_v16  ;;  %2566 = vmatpush3.bf16.msra.mxu1 %v3490_v7 }
 0x36c   :  { %v1705_v5 = vpack.c.bf16 %v1656_v17, %v1655_v52  ;;  %v2739_v23 = vpop.f32.mrb[44].mxu1 }
 0x36d   :  { %v1509_v26 = vadd.f32 %v2739_v23, %v3468_v27  ;;  %v1500_v28 = vpop.f32.mrb[45].mxu1 }
 0x36e   :  { %v1501_v4 = vadd.f32 %v3468_v27, %v1500_v28  ;;  %v2740_v29 = vpop.f32.mrb[46].mxu1  ;;  %2567 = vmatprep.subr.bf16.mxu1 %v1705_v5 }
 0x36f   :  { %v1512_v8 = vadd.f32 %v2740_v29, %v3468_v27  ;;  %v1503_v30 = vpop.f32.mrb[47].mxu1  ;;  %2568 = vmatpush3.bf16.msra.mxu1 %v3500_v21  ;;  %v1661_v18 = vmax.f32 %v1509_v26, 0.0 }
 0x370   :  { %v1504_v11 = vadd.f32 %v3468_v27, %v1503_v30  ;;  %2569 = vmatprep.subr.bf16.mxu1 %v1706_v20  ;;  %v1659_v7 = vmax.f32 %v1501_v4, 0.0 }
 0x371   :  { %v1662_v44 = vmax.f32 %v1512_v8, 0.0 }
 0x372   :  { %v1660_v19 = vmax.f32 %v1504_v11, 0.0 }
 0x373   :  { %v3529_v32 = vpack.c.bf16 %v1662_v44, %v1661_v18  ;;  %2570 = vmatpush3.bf16.msra.mxu1 %v3498_v59 }
 0x374   :  { %v3532_v33 = vpack.c.bf16 %v1660_v19, %v1659_v7  ;;  %v2743_v34 = vpop.f32.mrb[48].mxu1 }
 0x375   :  { %v1525_v10 = vadd.f32 %v2743_v34, %v3468_v27  ;;  %v1516_v37 = vpop.f32.mrb[49].mxu1 }
 0x376   :  { %v1517_v40 = vadd.f32 %v3468_v27, %v1516_v37  ;;  %v2744_v21 = vpop.f32.mrb[50].mxu1  ;;  %1756 = vmatmul.mubr.bf16.vlgmr.msra.gmra.mrb[76].mxu1 %v3180_v45 }
 0x377   :  { %v1528_v41 = vadd.f32 %v2744_v21, %v3468_v27  ;;  %v1519_v42 = vpop.f32.mrb[51].mxu1  ;;  %v1665_v47 = vmax.f32 %v1525_v10, 0.0 }
 0x378   :  { %v1520_v43 = vadd.f32 %v3468_v27, %v1519_v42  ;;  %v1663_v48 = vmax.f32 %v1517_v40, 0.0 }
 0x379   :  { %v1666_v25 = vmax.f32 %v1528_v41, 0.0 }
 0x37a   :  { %v1664_v59 = vmax.f32 %v1520_v43, 0.0 }
 0x37b   :  { %v3539_v49 = vpack.c.bf16 %v1666_v25, %v1665_v47 }
 0x37c   :  { %v3541_v50 = vpack.c.bf16 %v1664_v59, %v1663_v48  ;;  %v2747_v51 = vpop.f32.mrb[52].mxu1 }
 0x37d   :  { %v1541_v24 = vadd.f32 %v2747_v51, %v3468_v27  ;;  %v1532_v56 = vpop.f32.mrb[53].mxu1 }
 0x37e   :  { %v1533_v57 = vadd.f32 %v3468_v27, %v1532_v56  ;;  %v2748_v45 = vpop.f32.mrb[54].mxu1 }
 0x37f   :  { %v1544_v58 = vadd.f32 %v2748_v45, %v3468_v27  ;;  %v1535_v39 = vpop.f32.mrb[55].mxu1  ;;  %v1669_v63 = vmax.f32 %v1541_v24, 0.0 }
 0x380   :  { %v1536_v61 = vadd.f32 %v3468_v27, %v1535_v39  ;;  %v1667_v0 = vmax.f32 %v1533_v57, 0.0 }
 0x381   :  { %v1670_v36 = vmax.f32 %v1544_v58, 0.0 }
 0x382   :  { %v1668_v1 = vmax.f32 %v1536_v61, 0.0 }
 0x383   :  { %v3547_v38 = vpack.c.bf16 %v1670_v36, %v1669_v63 }
 0x384   :  { %v3549_v2 = vpack.c.bf16 %v1668_v1, %v1667_v0  ;;  %v2751_v35 = vpop.f32.mrb[56].mxu1 }
 0x385   :  { %v1557_v3 = vadd.f32 %v2751_v35, %v3468_v27  ;;  %v1548_v6 = vpop.f32.mrb[57].mxu1 }
 0x386   :  { %v1549_v9 = vadd.f32 %v3468_v27, %v1548_v6  ;;  %v2752_v54 = vpop.f32.mrb[58].mxu1 }
 0x387   :  { %v1560_v12 = vadd.f32 %v2752_v54, %v3468_v27  ;;  %v1551_v13 = vpop.f32.mrb[59].mxu1  ;;  %v1673_v14 = vmax.f32 %v1557_v3, 0.0 }
 0x388   :  { %v1552_v60 = vadd.f32 %v3468_v27, %v1551_v13  ;;  %v1671_v53 = vmax.f32 %v1549_v9, 0.0 }
 0x389   :  { %v1674_v55 = vmax.f32 %v1560_v12, 0.0 }
 0x38a   :  { %v1672_v15 = vmax.f32 %v1552_v60, 0.0 }
 0x38b   :  { %v3555_v16 = vpack.c.bf16 %v1674_v55, %v1673_v14 }
 0x38c   :  { %v3557_v62 = vpack.c.bf16 %v1672_v15, %v1671_v53  ;;  %v2755_v52 = vpop.f32.mrb[60].mxu1 }
 0x38d   :  { %v1573_v17 = vadd.f32 %v2755_v52, %v3468_v27  ;;  %v1564_v20 = vpop.f32.mrb[61].mxu1 }
 0x38e   :  { %v1565_v5 = vadd.f32 %v3468_v27, %v1564_v20  ;;  %v2756_v23 = vpop.f32.mrb[62].mxu1 }
 0x38f   :  { %v1576_v26 = vadd.f32 %v2756_v23, %v3468_v27  ;;  %v1567_v28 = vpop.f32.mrb[63].mxu1  ;;  %v1677_v29 = vmax.f32 %v1573_v17, 0.0 }
 0x390   :  { %v1568_v4 = vadd.f32 %v3468_v27, %v1567_v28  ;;  %v1675_v30 = vmax.f32 %v1565_v5, 0.0 }
 0x391   :  { %v1678_v8 = vmax.f32 %v1576_v26, 0.0  ;;  %v1873_v26 = vld [vmem:[%s3697_s13] sm:$0xf] }
 0x392   :  { %v1676_v11 = vmax.f32 %v1568_v4, 0.0 }
 0x393   :  { %v1716_v18 = vpack.c.bf16 %v1678_v8, %v1677_v29  ;;  %v1887_v8 = vsel %vm1885_vm4, %v1873_v26, 0  ;;  %v2437_v26 = vld [vmem:[%s3709_s21] ss:$0 sm:$0xff] }
 0x394   :  { %v1715_v44 = vpack.c.bf16 %v1676_v11, %v1675_v30  ;;  %v2759_v7 = vpop.f32.mrb[64].mxu1  ;;  %v1871_v30 = vld [vmem:[%s3698_s3] sm:$0x3] }
 0x395   :  { %v1589_v19 = vadd.f32 %v2759_v7, %v3468_v27  ;;  %v1580_v34 = vpop.f32.mrb[65].mxu1  ;;  %v1872_v11 = vpack.c.bf16 %v1871_v30, %v1871_v30  ;;  %v2413_v7 = vld [vmem:[%s3703_s12] ss:$0 sm:$0xff] }
 0x396   :  { %v1581_v10 = vadd.f32 %v3468_v27, %v1580_v34  ;;  %v2760_v37 = vpop.f32.mrb[66].mxu1  ;;  %2577 = vmatprep.subr.bf16.mxu0 %v1715_v44  ;;  %v2907_v44 = vld [vmem:[%s3699_s16 + $0x8] sm:$0xff]  }
 0x397   :  { %v1592_v40 = vadd.f32 %v2760_v37, %v3468_v27  ;;  %v1583_v21 = vpop.f32.mrb[67].mxu1  ;;  %2578 = vmatpush3.bf16.msra.mxu0 %v3532_v33  ;;  %v1681_v42 = vmax.f32 %v1589_v19, 0.0  ;;  %v2341_v37 = vld [vmem:[%s3704_s10] ss:$0 sm:$0xff] }
 0x398   :  { %v1584_v41 = vadd.f32 %v3468_v27, %v1583_v21  ;;  %2579 = vmatprep.subr.bf16.mxu0 %v1716_v18  ;;  %v1679_v47 = vmax.f32 %v1581_v10, 0.0  ;;  %v2906_v18 = vld [vmem:[%s3699_s16] sm:$0xff]  }
 0x399   :  { %v1682_v43 = vmax.f32 %v1592_v40, 0.0 }
 0x39a   :  { %v1680_v25 = vmax.f32 %v1584_v41, 0.0 }
 0x39b   :  { %v1718_v48 = vpack.c.bf16 %v1682_v43, %v1681_v42  ;;  %2580 = vmatpush3.bf16.msra.mxu0 %v3529_v32  ;;  %v2908_v42 = vld [vmem:[%s3700_s15] sm:$0xff]   ;;  %v982_v43 = vadd.f32 %v2341_v37, %v3463_v22 }
 0x39c   :  { %v1717_v59 = vpack.c.bf16 %v1680_v25, %v1679_v47  ;;  %v2763_v51 = vpop.f32.mrb[68].mxu1  ;;  %v2909_v25 = vld [vmem:[%s3700_s15 + $0x8] sm:$0xff]  }
 0x39d   :  { %v1605_v24 = vadd.f32 %v2763_v51, %v3468_v27  ;;  %v1596_v56 = vpop.f32.mrb[69].mxu1  ;;  %v987_v51 = vmax.f32 %v982_v43, 0.0 }
 0x39e   :  { %v1597_v57 = vadd.f32 %v3468_v27, %v1596_v56  ;;  %v2764_v45 = vpop.f32.mrb[70].mxu1  ;;  %2581 = vmatprep.subr.bf16.mxu0 %v1717_v59 }
 0x39f   :  { %v1608_v33 = vadd.f32 %v2764_v45, %v3468_v27  ;;  %v1599_v58 = vpop.f32.mrb[71].mxu1  ;;  %2582 = vmatpush3.bf16.msra.mxu0 %v3541_v50  ;;  %v1685_v61 = vmax.f32 %v1605_v24, 0.0  ;;  %v2910_v45 = vld [vmem:[%s3701_s17] sm:$0xff]  }
 0x3a0   :  { %v1600_v39 = vadd.f32 %v3468_v27, %v1599_v58  ;;  %2583 = vmatprep.subr.bf16.mxu0 %v1718_v48  ;;  %v1683_v32 = vmax.f32 %v1597_v57, 0.0  ;;  %v2417_v48 = vld [vmem:[%s3705_s14] ss:$0 sm:$0xff] }
 0x3a1   :  { %v1686_v63 = vmax.f32 %v1608_v33, 0.0  ;;  %v1930_v33 = vpack.c.bf16 %v987_v51, %v987_v51 }
 0x3a2   :  { %v1684_v36 = vmax.f32 %v1600_v39, 0.0  ;;  %v2911_v39 = vld [vmem:[%s3701_s17 + $0x8] sm:$0xff]  }
 0x3a3   :  { %v1720_v0 = vpack.c.bf16 %v1686_v63, %v1685_v61  ;;  %2584 = vmatpush3.bf16.msra.mxu0 %v3539_v49  ;;  %v2912_v63 = vld [vmem:[%s3702_s20] sm:$0xff]  }
 0x3a4   :  { %v1719_v1 = vpack.c.bf16 %v1684_v36, %v1683_v32  ;;  %v2767_v35 = vpop.f32.mrb[72].mxu1  ;;  %v2913_v32 = vld [vmem:[%s3702_s20 + $0x8] sm:$0xff]   ;;  %v2129_v36 = vld [vmem:[%s3706_s4] sm:$0x3] }
 0x3a5   :  { %v1621_v3 = vadd.f32 %v2767_v35, %v3468_v27  ;;  %v1612_v6 = vpop.f32.mrb[73].mxu1  ;;  %v2915_v35 = vld [vmem:[%s3707_s19 + $0x8] sm:$0xff]  }
 0x3a6   :  { %v1613_v9 = vadd.f32 %v3468_v27, %v1612_v6  ;;  %v2768_v54 = vpop.f32.mrb[74].mxu1  ;;  %2585 = vmatprep.subr.bf16.mxu0 %v1719_v1  ;;  %v2914_v1 = vld [vmem:[%s3707_s19] sm:$0xff]   ;;  %v2917_v6 = vld [vmem:[%s3707_s19 + $0x18] sm:$0xff]  }
 0x3a7   :  { %v1624_v50 = vadd.f32 %v2768_v54, %v3468_v27  ;;  %v1615_v12 = vpop.f32.mrb[75].mxu1  ;;  %2586 = vmatpush3.bf16.msra.mxu0 %v3549_v2  ;;  %v1689_v60 = vmax.f32 %v1621_v3, 0.0  ;;  %v2916_v3 = vld [vmem:[%s3707_s19 + $0x10] sm:$0xff]  }
 0x3a8   :  { %v1616_v13 = vadd.f32 %v3468_v27, %v1615_v12  ;;  %2587 = vmatprep.subr.bf16.mxu0 %v1720_v0  ;;  %v1687_v49 = vmax.f32 %v1613_v9, 0.0  ;;  %v2904_v27 = vld [vmem:[%s3696_s11] sm:$0xff]   ;;  %v2130_v0 = vpack.c.bf16 %v2129_v36, %v2129_v36 }
 0x3a9   :  { %v1690_v14 = vmax.f32 %v1624_v50, 0.0 }
 0x3aa   :  { %v1688_v55 = vmax.f32 %v1616_v13, 0.0 }
 0x3ab   :  { %v1722_v53 = vpack.c.bf16 %v1690_v14, %v1689_v60  ;;  %2588 = vmatpush3.bf16.msra.mxu0 %v3547_v38  ;;  %v2905_v38 = vld [vmem:[%s3696_s11 + $0x8] sm:$0xff]  }
 0x3ac   :  { %v1721_v15 = vpack.c.bf16 %v1688_v55, %v1687_v49 }
 0x3ae   :  { %2589 = vmatprep.subr.bf16.mxu0 %v1721_v15  ;;  %v2428_v15 = vld [vmem:[%s3708_s18] ss:$0 sm:$0xff] }
 0x3af   :  { %2590 = vmatpush3.bf16.msra.mxu0 %v3557_v62 }
 0x3b0   :  { %2591 = vmatprep.subr.bf16.mxu0 %v1722_v53 }
 0x3b3   :  { %2592 = vmatpush3.bf16.msra.mxu0 %v3555_v16 }
 0x3b4   :  { %2769 = vmatprep.subr.bf16.mxu0 %v2919_v46 }
 0x3b6   :  { %1796 = vmatmul.mubr.bf16.vlgmr.msra.gmra.mrb[64].mxu0 %v3308_v31 }
 0x3b7   :  { %2773 = vmatprep.mubr.msk.bf16.mxu0 %vm2920_vm2, %v2919_v46  ;;  %2770 = vmatpush3.bf16.msra.mxu0 %v2904_v27 }
 0x3b8   :  { %2771 = vmatprep.subr.bf16.mxu0 %v2919_v46 }
 0x3bb   :  { %2772 = vmatpush3.bf16.msra.mxu0 %v2905_v38 }
 0x3bc   :  { %2777 = vmatprep.subr.bf16.mxu0 %v2919_v46 }
 0x449   :  { %v2571_v2 = vpop.f32.mrb[76].mxu1 }
 0x44a   :  { %v2572_v16 = vpop.f32.mrb[77].mxu1 }
 0x44b   :  { %v2573_v31 = vadd.f32 %v2572_v16, %v2571_v2  ;;  %v2574_v62 = vpop.f32.mrb[78].mxu1 }
 0x44c   :  { %v2575_v52 = vpop.f32.mrb[79].mxu1 }
 0x489   :  { %v2593_v17 = vpop.f32.mrb[64].mxu0 }
 0x48a   :  { %v2594_v20 = vpop.f32.mrb[65].mxu0 }
 0x48b   :  { %v2595_v5 = vadd.f32 %v2594_v20, %v2593_v17  ;;  %v2596_v23 = vpop.f32.mrb[66].mxu0 }
 0x48c   :  { %v2597_v28 = vpop.f32.mrb[67].mxu0 }
 0x48d   :  { %v1798_v4 = vadd.f32 %v2595_v5, %v2573_v31 }
 0x48f   :  { %v1803_v29 = vpack.c.bf16 %v1798_v4, %v1798_v4 }
 0x491   :  { %2774 = vmatmul.mubr.msk.bf16.vlgmr.msra.gmra.mrb[68].mxu0 %vm943_vm3, %v1803_v29 }
 0x492   :  { %2778 = vmatpush3.bf16.msra.mxu0 %v1887_v8  ;;  %2779 = vmatprep.mubr.msk.bf16.mxu0 %vm2920_vm2, %v2919_v46 }
 0x493   :  { %2783 = vmatprep.subr.bf16.mxu0 %v2919_v46 }
 0x499   :  { %2780 = vmatmul.mubr.msk.bf16.vlgmr.msra.gmra.mrb[72].mxu0 %vm1881_vm5, %v1872_v11 }
 0x49a   :  { %2787 = vmatprep.mubr.msk.bf16.mxu0 %vm2920_vm2, %v2919_v46  ;;  %2784 = vmatpush3.bf16.msra.mxu0 %v2906_v18 }
 0x49b   :  { %2785 = vmatprep.subr.bf16.mxu0 %v2919_v46 }
 0x49e   :  { %2786 = vmatpush3.bf16.msra.mxu0 %v2907_v44 }
 0x49f   :  { %2791 = vmatprep.subr.bf16.mxu0 %v2919_v46 }
 0x564   :  { %v1864_v19 = vpop.f32.mrb[68].mxu0 }
 0x565   :  { %v1865_v34 = vadd.f32 %v2413_v7, %v1864_v19  ;;  %v2775_v10 = vpop.f32.mrb[69].mxu0 }
 0x566   :  { %v1867_v40 = vpop.f32.mrb[70].mxu0 }
 0x567   :  { %v1870_v21 = vmax.f32 %v1865_v34, 0.0  ;;  %v2776_v41 = vpop.f32.mrb[71].mxu0 }
 0x569   :  { %v1935_v47 = vpack.c.bf16 %v1870_v21, %v1870_v21 }
 0x56b   :  { %2788 = vmatmul.mubr.msk.bf16.vlgmr.msra.gmra.mrb[76].mxu0 %vm943_vm3, %v1935_v47 }
 0x56c   :  { %2792 = vmatpush3.bf16.msra.mxu0 %v2908_v42  ;;  %2795 = vmatprep.mubr.msk.bf16.mxu0 %vm2920_vm2, %v2919_v46  ;;  %v1923_v59 = vpop.f32.mrb[72].mxu0 }
 0x56d   :  { %2793 = vmatprep.subr.bf16.mxu0 %v2919_v46  ;;  %v2781_v22 = vpop.f32.mrb[73].mxu0  ;;  %v1924_v56 = vadd.f32 %v2417_v48, %v1923_v59 }
 0x56e   :  { %v1926_v24 = vpop.f32.mrb[74].mxu0 }
 0x56f   :  { %v2782_v57 = vpop.f32.mrb[75].mxu0  ;;  %v1929_v58 = vmax.f32 %v1924_v56, 0.0 }
 0x570   :  { %2794 = vmatpush3.bf16.msra.mxu0 %v2909_v25 }
 0x571   :  { %2799 = vmatprep.subr.bf16.mxu0 %v2919_v46  ;;  %v2050_v61 = vpack.c.bf16 %v1929_v58, %v1929_v58 }
 0x573   :  { %2796 = vmatmul.mubr.msk.bf16.vlgmr.msra.gmra.mrb[80].mxu0 %vm943_vm3, %v1930_v33 }
 0x574   :  { %2800 = vmatpush3.bf16.msra.mxu0 %v2910_v45  ;;  %2803 = vmatprep.mubr.msk.bf16.mxu0 %vm2920_vm2, %v2919_v46 }
 0x575   :  { %2801 = vmatprep.subr.bf16.mxu0 %v2919_v46 }
 0x578   :  { %2802 = vmatpush3.bf16.msra.mxu0 %v2911_v39 }
 0x579   :  { %2807 = vmatprep.subr.bf16.mxu0 %v2919_v46 }
 0x57b   :  { %2804 = vmatmul.mubr.msk.bf16.vlgmr.msra.gmra.mrb[84].mxu0 %vm943_vm3, %v2050_v61 }
 0x57c   :  { %2808 = vmatpush3.bf16.msra.mxu0 %v2912_v63  ;;  %2811 = vmatprep.mubr.msk.bf16.mxu0 %vm2920_vm2, %v2919_v46 }
 0x57d   :  { %2809 = vmatprep.subr.bf16.mxu0 %v2919_v46 }
 0x580   :  { %2810 = vmatpush3.bf16.msra.mxu0 %v2913_v32 }
 0x581   :  { %2815 = vmatprep.subr.bf16.mxu0 %v2919_v46 }
 0x583   :  { %2812 = vmatmul.mubr.msk.bf16.vlgmr.msra.gmra.mrb[88].mxu0 %vm943_vm3, %v2130_v0 }
 0x584   :  { %2823 = vmatprep.mubr.msk.bf16.mxu0 %vm2920_vm2, %v2919_v46  ;;  %2816 = vmatpush3.bf16.msra.mxu0 %v2914_v1 }
 0x585   :  { %2817 = vmatprep.subr.bf16.mxu0 %v2919_v46 }
 0x588   :  { %2818 = vmatpush3.bf16.msra.mxu0 %v2915_v35 }
 0x589   :  { %2819 = vmatprep.subr.bf16.mxu0 %v2919_v46 }
 0x58c   :  { %2820 = vmatpush3.bf16.msra.mxu0 %v2916_v3 }
 0x58d   :  { %2821 = vmatprep.subr.bf16.mxu0 %v2919_v46 }
 0x590   :  { %2822 = vmatpush3.bf16.msra.mxu0 %v2917_v6 }
 0x63e   :  { %v1989_v9 = vpop.f32.mrb[76].mxu0 }
 0x63f   :  { %v2789_v54 = vpop.f32.mrb[77].mxu0 }
 0x640   :  { %v1992_v50 = vpop.f32.mrb[78].mxu0 }
 0x641   :  { %v2790_v12 = vpop.f32.mrb[79].mxu0 }
 0x646   :  { %v2044_v13 = vpop.f32.mrb[80].mxu0 }
 0x647   :  { %v2045_v60 = vadd.f32 %v2044_v13, %v1989_v9  ;;  %v2797_v14 = vpop.f32.mrb[81].mxu0 }
 0x648   :  { %v2047_v49 = vpop.f32.mrb[82].mxu0 }
 0x649   :  { %v2798_v55 = vpop.f32.mrb[83].mxu0 }
 0x64e   :  { %v2104_v53 = vpop.f32.mrb[84].mxu0 }
 0x64f   :  { %v2110_v46 = vadd.f32 %v2104_v53, %v2045_v60  ;;  %v2805_v27 = vpop.f32.mrb[85].mxu0 }
 0x650   :  { %v2107_v38 = vpop.f32.mrb[86].mxu0 }
 0x651   :  { %v2118_v2 = vadd.f32 %v2428_v15, %v2110_v46  ;;  %v2806_v16 = vpop.f32.mrb[87].mxu0 }
 0x653   :  { %v2119_v31 = vmax.f32 %v2118_v2, 0.0 }
 0x655   :  { %v2120_v62 = vpack.c.bf16 %v2119_v31, %v2119_v31 }
 0x656   :  { %v2184_v52 = vpop.f32.mrb[88].mxu0 }
 0x657   :  { %2824 = vmatmul.mubr.msk.bf16.vlgmr.msra.gmra.mrb[92].mxu0 %vm2214_vm6, %v2120_v62  ;;  %v2813_v17 = vpop.f32.mrb[89].mxu0 }
 0x658   :  { %v2187_v20 = vpop.f32.mrb[90].mxu0 }
 0x659   :  { %v2814_v5 = vpop.f32.mrb[91].mxu0 }
 0x72a   :  { %v2252_v23 = vpop.f32.mrb[92].mxu0 }
 0x72b   :  { %v2253_v28 = vadd.f32 %v2252_v23, %v2184_v52  ;;  %v2825_v4 = vpop.f32.mrb[93].mxu0 }
 0x72c   :  { %v2255_v29 = vpop.f32.mrb[94].mxu0 }
 0x72d   :  { %v2265_v8 = vadd.f32 %v2437_v26, %v2253_v28  ;;  %v2826_v30 = vpop.f32.mrb[95].mxu0 }
 0x72f   :  { %2267 = vst.msk [vmem:[%s3710_s22] sm:$0x3] %vm2266_vm7, %v2265_v8 }

</bundles_post_ra>
